<compile_context>
chip_gen: v7x
topology: tpu7x:2x2x1
jax: 0.10.0
libtpu: 0.0.40
codegen_flags: <defaults>
</compile_context>

<pallas_src>
import jax
import jax.numpy as jnp
from jax import lax
from jax.experimental import pallas as pl
from jax.experimental.pallas import tpu as pltpu


# ------------------------- fused LSTM + MDN kernel ---------------------------
def make_mdnrnn_kernel(L, H, P, B, T, G, W_out, squeeze_batch, unroll):
    """One invocation: full time recurrence + MDN heads. B is the padded batch."""
    GP = G * P
    HEAD = G + 2 * GP
    nw = 4 + 3 * (L - 1)          # layer 0: w_ih0_t, w_hh0_t, bias, w_hr_t
                                  # layer>0: w_cat_t,  bias,    w_hr_t

    def kernel(x_ref, h0_ref, c0_ref, *rest):
        w_refs = rest[:nw]
        w_head_ref, b_head_ref = rest[nw], rest[nw + 1]
        head_ref, hn_ref, cn_ref = rest[nw + 2], rest[nw + 3], rest[nw + 4]
        xp_scr, y_scr = rest[nw + 5], rest[nw + 6]

        # ---- hoisted layer-0 input projection over the whole flat sequence ----
        # x is already (T*B, I) time-major; bias folded in here.
        xp_scr[...] = (jnp.dot(x_ref[...], w_refs[0][...],
                               preferred_element_type=jnp.float32)
                       + w_refs[2][...])

        # ---- hoist ALL weight/bias reads out of the recurrence (read once) ----
        layer_w = [(None, w_refs[1][...], None, w_refs[3][...])]   # layer 0
        for l in range(1, L):
            base = 4 + 3 * (l - 1)
            layer_w.append((w_refs[base][...], None,
                            w_refs[base + 1][...], w_refs[base + 2][...]))

        hs0 = tuple(h0_ref[l] for l in range(L))
        cs0 = tuple(c0_ref[l] for l in range(L))

        def step(t, carry):
            hs, cs = carry
            row = pl.multiple_of(t * B, 8)           # sublane-aligned dynamic slice
            new_hs, new_cs = [], []
            inp = None
            for l in range(L):
                w_cat_v, w_hh0_v, b_v, w_hr_v = layer_w[l]
                h_prev, c_prev = hs[l], cs[l]
                if l == 0:
                    gates = xp_scr[pl.ds(row, B), :] + jnp.dot(
                        h_prev, w_hh0_v, preferred_element_type=jnp.float32)
                else:
                    # merged input+recurrent matmul: one MXU push per layer/step
                    xh = jnp.concatenate([inp, h_prev], axis=1)      # (B, 2P)
                    gates = (jnp.dot(xh, w_cat_v,
                                     preferred_element_type=jnp.float32) + b_v)
                # gate order [i | f | o | g]: one sigmoid (3H) + one tanh (H)
                sg = jax.nn.sigmoid(gates[:, :3 * H])
                g_g = jnp.tanh(gates[:, 3 * H:])
                i_g = sg[:, :H]
                f_g = sg[:, H:2 * H]
                o_g = sg[:, 2 * H:3 * H]
                c_new = f_g * c_prev + i_g * g_g
                h_new = jnp.dot(o_g * jnp.tanh(c_new), w_hr_v,
                                preferred_element_type=jnp.float32)   # (B, P)
                new_hs.append(h_new)
                new_cs.append(c_new)
                inp = h_new
            y_scr[pl.ds(row, B), :] = inp                             # VMEM accumulate
            return tuple(new_hs), tuple(new_cs)

        hs_f, cs_f = lax.fori_loop(0, T, step, (hs0, cs0), unroll=unroll)
        for l in range(L):                                            # written once
            hn_ref[l] = hs_f[l]
            cn_ref[l] = cs_f[l]

        # ---- fused MDN tail: one matmul vs. 128-lane-padded head weights ----
        heads = (jnp.dot(y_scr[...], w_head_ref[...],
                         preferred_element_type=jnp.float32) + b_head_ref[...])
        logits = heads[:, :G]
        mu = heads[:, G:G + GP]
        sig = jnp.exp(heads[:, G + GP:HEAD])
        if squeeze_batch:
            # torch: x.squeeze(0) -> (T, P); softmax over the gaussian axis
            m = jnp.max(logits, axis=1, keepdims=True)
            e = jnp.exp(logits - m)
            pi = e / jnp.sum(e, axis=1, keepdims=True)
        else:
            # torch: softmax(dim=1) on (B, T, G): normalize over T per (b, g)
            lg = logits.reshape(T, B, G)
            m = jnp.max(lg, axis=0, keepdims=True)
            e = jnp.exp(lg - m)
            pi = (e / jnp.sum(e, axis=0, keepdims=True)).reshape(T * B, G)
        parts = [pi, mu, sig]
        if W_out > HEAD:
            parts.append(jnp.zeros((T * B, W_out - HEAD), jnp.float32))
        head_ref[...] = jnp.concatenate(parts, axis=1)   # single lane-dense store

    return kernel


# --------------------------- parameter packing --------------------------------
def pack_kernel_params(params, W_out):
    """torch-layout params -> kernel layout: gates [i|f|o|g], fused bias,
    transposed weights, merged [w_ih;w_hh] for l>0, 128-lane-padded MDN head."""
    H = params["hidden_size"]
    P = params["output_size"]
    G = params["n_gaussians"]
    HEAD = G + 2 * G * P
    perm = jnp.concatenate([jnp.arange(0, 2 * H),
                            jnp.arange(3 * H, 4 * H),
                            jnp.arange(2 * H, 3 * H)])   # torch [i,f,g,o] -> [i,f,o,g]
    weights = []
    for l, (w_ih, w_hh, b_ih, b_hh, w_hr) in enumerate(params["lstm"]):
        w_ih_t = jnp.transpose(w_ih[perm])               # (in_l, 4H)
        w_hh_t = jnp.transpose(w_hh[perm])               # (P, 4H)
        bias = (b_ih + b_hh)[perm].reshape(1, 4 * H)     # fused bias
        w_hr_t = jnp.transpose(w_hr)                     # (H, P)
        if l == 0:
            weights.extend([w_ih_t, w_hh_t, bias, w_hr_t])
        else:
            weights.extend([jnp.concatenate([w_ih_t, w_hh_t], axis=0),  # (2P, 4H)
                            bias, w_hr_t])
    w_pi, b_pi, w_mu, b_mu, w_sg, b_sg = params["mdn"]
    w_head = jnp.concatenate([w_pi.T, w_mu.T, w_sg.T], axis=1)          # (P, HEAD)
    b_head = jnp.concatenate([b_pi, b_mu, b_sg]).reshape(1, HEAD)
    w_head_pad = jnp.zeros((w_head.shape[0], W_out), jnp.float32).at[:, :HEAD].set(w_head)
    b_head_pad = jnp.zeros((1, W_out), jnp.float32).at[:, :HEAD].set(b_head)
    return weights, w_head_pad, b_head_pad


# ------------------------------ wrapper ---------------------------------------
def mdnrnn_forward(params, x, h, *, unroll=8):
    h0, c0 = h
    B, T, I = x.shape
    L = params["layers"]
    H = params["hidden_size"]
    P = params["output_size"]
    G = params["n_gaussians"]
    GP = G * P
    HEAD = G + 2 * GP
    W_out = ((HEAD + 127) // 128) * 128

    weights, w_head_pad, b_head_pad = pack_kernel_params(params, W_out)

    # Pad batch to a multiple of 8 sublanes; x is handed to the kernel as a flat
    # time-major 2-D (T*B_pad, I) array so the kernel never reshapes it.
    B_pad = ((B + 7) // 8) * 8
    N_pad = T * B_pad
    xt = (jnp.zeros((T, B_pad, I), jnp.float32)
          .at[:, :B, :].set(jnp.transpose(x, (1, 0, 2)))
          .reshape(N_pad, I))
    h0_p = jnp.zeros((L, B_pad, P), jnp.float32).at[:, :B, :].set(h0)
    c0_p = jnp.zeros((L, B_pad, H), jnp.float32).at[:, :B, :].set(c0)

    inputs = [xt, h0_p, c0_p] + list(weights) + [w_head_pad, b_head_pad]
    in_specs = [pl.BlockSpec(a.shape, lambda i, nd=a.ndim: (0,) * nd)
                for a in inputs]

    # Advisory cost estimate so XLA schedules around this long single-program kernel.
    flops = int(
        2 * N_pad * I * 4 * H                                   # hoisted x-projection
        + T * B_pad * (2 * P * 4 * H + 2 * H * P)               # layer 0 per step
        + T * B_pad * (L - 1) * (2 * (2 * P) * 4 * H + 2 * H * P)
        + 2 * N_pad * P * W_out)                                # MDN head
    transcendentals = int(T * B_pad * L * 5 * H + N_pad * (2 * G + GP))
    bytes_accessed = int(4 * (sum(int(a.size) for a in inputs)
                              + N_pad * W_out + L * B_pad * (P + H)))

    head_tm, hn_p, cn_p = pl.pallas_call(
        make_mdnrnn_kernel(L, H, P, B_pad, T, G, W_out,
                           squeeze_batch=(B == 1), unroll=max(1, min(T, unroll))),
        out_shape=(
            jax.ShapeDtypeStruct((N_pad, W_out), jnp.float32),
            jax.ShapeDtypeStruct((L, B_pad, P), jnp.float32),
            jax.ShapeDtypeStruct((L, B_pad, H), jnp.float32),
        ),
        grid_spec=pltpu.PrefetchScalarGridSpec(
            num_scalar_prefetch=0,
            grid=(1,),
            in_specs=in_specs,
            out_specs=[
                pl.BlockSpec((N_pad, W_out), lambda i: (0, 0)),
                pl.BlockSpec((L, B_pad, P), lambda i: (0, 0, 0)),
                pl.BlockSpec((L, B_pad, H), lambda i: (0, 0, 0)),
            ],
            scratch_shapes=[
                pltpu.VMEM((N_pad, 4 * H), jnp.float32),   # hoisted x-projection (flat)
                pltpu.VMEM((N_pad, P), jnp.float32),       # y accumulator (flat)
            ],
        ),
        compiler_params=pltpu.CompilerParams(
            dimension_semantics=("arbitrary",),
            vmem_limit_bytes=32 * 1024 * 1024),
        cost_estimate=pl.CostEstimate(flops=flops,
                                      transcendentals=transcendentals,
                                      bytes_accessed=bytes_accessed),
    )(*inputs)

    # time-major rows -> torch batch-major rows (fused with the un-pad slice),
    # then slice the lane-dense slab into pi | mu | sigma.
    slab = (head_tm.reshape(T, B_pad, W_out)[:, :B, :]
            .transpose(1, 0, 2).reshape(B * T, W_out))
    pi_bm = slab[:, :G]
    mu = slab[:, G:G + GP].reshape(-1, G, P)
    sigma = slab[:, G + GP:HEAD].reshape(-1, G, P)
    pi = pi_bm if B == 1 else pi_bm.reshape(B, T, G)
    hn = hn_p[:, :B, :]
    cn = cn_p[:, :B, :]
    return pi, mu, sigma, (hn, cn)


# --------------------------- parameter init (torch layout) --------------------
def init_params(key, n_gaussians, input_size, hidden_size, output_size, layers):
    H, P, G = hidden_size, output_size, n_gaussians
    n_keys = 5 * layers + 6
    keys = jax.random.split(key, n_keys)
    ki = iter(range(n_keys))

    def unif(shape, s):
        return jax.random.uniform(keys[next(ki)], shape, jnp.float32, -s, s)

    stdv = 1.0 / (H ** 0.5)
    lstm = []
    for l in range(layers):
        in_l = input_size if l == 0 else P
        lstm.append((unif((4 * H, in_l), stdv),   # weight_ih_l{l}
                     unif((4 * H, P), stdv),      # weight_hh_l{l} (proj_size)
                     unif((4 * H,), stdv),        # bias_ih_l{l}
                     unif((4 * H,), stdv),        # bias_hh_l{l}
                     unif((P, H), stdv)))         # weight_hr_l{l}

    s_mdn = 1.0 / (P ** 0.5)
    mdn = (unif((G, P), s_mdn), unif((G,), s_mdn),
           unif((G * P, P), s_mdn), unif((G * P,), s_mdn),
           unif((G * P, P), s_mdn), unif((G * P,), s_mdn))

    return {"layers": layers, "input_size": input_size, "hidden_size": H,
            "output_size": P, "n_gaussians": G, "lstm": lstm, "mdn": mdn}


# ------------------------ plain-JAX reference ----------------------------------
def reference_forward(params, x, h):
    h0, c0 = h
    B, T, _ = x.shape
    L, H, P, G = (params["layers"], params["hidden_size"],
                  params["output_size"], params["n_gaussians"])
    hs = [h0[l] for l in range(L)]
    cs = [c0[l] for l in range(L)]
    ys = []
    for t in range(T):
        inp = x[:, t, :]
        for l in range(L):
            w_ih, w_hh, b_ih, b_hh, w_hr = params["lstm"][l]
            gates = inp @ w_ih.T + hs[l] @ w_hh.T + b_ih + b_hh   # torch order i|f|g|o
            i_g = jax.nn.sigmoid(gates[:, :H])
            f_g = jax.nn.sigmoid(gates[:, H:2 * H])
            g_g = jnp.tanh(gates[:, 2 * H:3 * H])
            o_g = jax.nn.sigmoid(gates[:, 3 * H:])
            c_new = f_g * cs[l] + i_g * g_g
            h_new = (o_g * jnp.tanh(c_new)) @ w_hr.T
            hs[l], cs[l] = h_new, c_new
            inp = h_new
        ys.append(inp)
    y = jnp.stack(ys, axis=1)                          # (B, T, P) batch_first
    hn, cn = jnp.stack(hs, 0), jnp.stack(cs, 0)

    w_pi, b_pi, w_mu, b_mu, w_sg, b_sg = params["mdn"]
    xm = jnp.squeeze(y, axis=0) if B == 1 else y       # mimic torch .squeeze(0)
    pi = jax.nn.softmax(xm @ w_pi.T + b_pi, axis=1)
    mu = (xm @ w_mu.T + b_mu).reshape(-1, G, P)
    sigma = jnp.exp(xm @ w_sg.T + b_sg).reshape(-1, G, P)
    return pi, mu, sigma, (hn, cn)


if __name__ == "__main__":
    n_gaussians, input_size, hidden_size, output_size, layers = 5, 4, 32, 8, 2
    B, T = 2, 8

    key = jax.random.PRNGKey(0)
    kx, kp = jax.random.split(key)
    params = init_params(kp, n_gaussians, input_size, hidden_size, output_size, layers)
    x = jax.random.normal(kx, (B, T, input_size), jnp.float32)
    # initial_state(batch_size): zeros (layers, B, output_size), (layers, B, hidden_size)
    h0 = jnp.zeros((layers, B, output_size), jnp.float32)
    c0 = jnp.zeros((layers, B, hidden_size), jnp.float32)

    pi, mu, sigma, (hn, cn) = mdnrnn_forward(params, x, (h0, c0))
    jax.block_until_ready((pi, mu, sigma, hn, cn))

    rpi, rmu, rsig, (rhn, rcn) = reference_forward(params, x, (h0, c0))
    for got, ref in ((pi, rpi), (mu, rmu), (sigma, rsig), (hn, rhn), (cn, rcn)):
        assert got.shape == ref.shape, (got.shape, ref.shape)
        assert jnp.allclose(got, ref, atol=1e-3, rtol=1e-3), "kernel/reference mismatch"

    print("KERNEL_OK")
</pallas_src>

<mosaic_0001>
module attributes {stable_mosaic.version = 11 : i64} {
  func.func @kernel(%arg0: i32, %arg1: memref<64x4xf32, #tpu.memory_space<vmem>>, %arg2: memref<2x8x8xf32, #tpu.memory_space<vmem>>, %arg3: memref<2x8x32xf32, #tpu.memory_space<vmem>>, %arg4: memref<4x128xf32, #tpu.memory_space<vmem>>, %arg5: memref<8x128xf32, #tpu.memory_space<vmem>>, %arg6: memref<1x128xf32, #tpu.memory_space<vmem>>, %arg7: memref<32x8xf32, #tpu.memory_space<vmem>>, %arg8: memref<16x128xf32, #tpu.memory_space<vmem>>, %arg9: memref<1x128xf32, #tpu.memory_space<vmem>>, %arg10: memref<32x8xf32, #tpu.memory_space<vmem>>, %arg11: memref<8x128xf32, #tpu.memory_space<vmem>>, %arg12: memref<1x128xf32, #tpu.memory_space<vmem>>, %arg13: memref<64x128xf32, #tpu.memory_space<vmem>>, %arg14: memref<2x8x8xf32, #tpu.memory_space<vmem>>, %arg15: memref<2x8x32xf32, #tpu.memory_space<vmem>>, %arg16: memref<64x128xf32, #tpu.memory_space<vmem>>, %arg17: memref<64x8xf32, #tpu.memory_space<vmem>>) attributes {dimension_semantics = [#tpu.dimension_semantics<arbitrary>], iteration_bounds = array<i64: 1>, scalar_prefetch = 0 : i64, scratch_operands = 2 : i64, tpu.core_type = #tpu.core_type<tc>, window_params = [{pipeline_mode = #tpu.pipeline_mode<synchronous>, transform_indices = @transform_0, window_bounds = array<i64: 64, 4>}, {pipeline_mode = #tpu.pipeline_mode<synchronous>, transform_indices = @transform_1, window_bounds = array<i64: 2, 8, 8>}, {pipeline_mode = #tpu.pipeline_mode<synchronous>, transform_indices = @transform_2, window_bounds = array<i64: 2, 8, 32>}, {pipeline_mode = #tpu.pipeline_mode<synchronous>, transform_indices = @transform_3, window_bounds = array<i64: 4, 128>}, {pipeline_mode = #tpu.pipeline_mode<synchronous>, transform_indices = @transform_4, window_bounds = array<i64: 8, 128>}, {pipeline_mode = #tpu.pipeline_mode<synchronous>, transform_indices = @transform_5, window_bounds = array<i64: 1, 128>}, {pipeline_mode = #tpu.pipeline_mode<synchronous>, transform_indices = @transform_6, window_bounds = array<i64: 32, 8>}, {pipeline_mode = #tpu.pipeline_mode<synchronous>, transform_indices = @transform_7, window_bounds = array<i64: 16, 128>}, {pipeline_mode = #tpu.pipeline_mode<synchronous>, transform_indices = @transform_8, window_bounds = array<i64: 1, 128>}, {pipeline_mode = #tpu.pipeline_mode<synchronous>, transform_indices = @transform_9, window_bounds = array<i64: 32, 8>}, {pipeline_mode = #tpu.pipeline_mode<synchronous>, transform_indices = @transform_10, window_bounds = array<i64: 8, 128>}, {pipeline_mode = #tpu.pipeline_mode<synchronous>, transform_indices = @transform_11, window_bounds = array<i64: 1, 128>}, {pipeline_mode = #tpu.pipeline_mode<synchronous>, transform_indices = @transform_12, window_bounds = array<i64: 64, 128>}, {pipeline_mode = #tpu.pipeline_mode<synchronous>, transform_indices = @transform_13, window_bounds = array<i64: 2, 8, 8>}, {pipeline_mode = #tpu.pipeline_mode<synchronous>, transform_indices = @transform_14, window_bounds = array<i64: 2, 8, 32>}]} {
    %c0 = arith.constant 0 : index
    %c0_0 = arith.constant 0 : index
    %0 = vector.load %arg1[%c0, %c0_0] : memref<64x4xf32, #tpu.memory_space<vmem>>, vector<64x4xf32>
    %c0_1 = arith.constant 0 : index
    %c0_2 = arith.constant 0 : index
    %1 = vector.load %arg4[%c0_1, %c0_2] : memref<4x128xf32, #tpu.memory_space<vmem>>, vector<4x128xf32>
    %cst = arith.constant dense<0.000000e+00> : vector<64x128xf32>
    %2 = tpu.matmul %0, %1, %cst {dimension_numbers = #tpu.dot_dimension_numbers<[1], [0], [0], [1], [0, 0, 1, 1], [], []>} : vector<64x4xf32>, vector<4x128xf32>, vector<64x128xf32> -> vector<64x128xf32>
    %c0_3 = arith.constant 0 : index
    %c0_4 = arith.constant 0 : index
    %3 = vector.load %arg6[%c0_3, %c0_4] : memref<1x128xf32, #tpu.memory_space<vmem>>, vector<1x128xf32>
    %4 = vector.broadcast %3 : vector<1x128xf32> to vector<64x128xf32>
    %5 = arith.addf %2, %4 : vector<64x128xf32>
    %c0_5 = arith.constant 0 : index
    %c0_6 = arith.constant 0 : index
    %6 = vector.load %arg16[%c0_5, %c0_6] : memref<64x128xf32, #tpu.memory_space<vmem>>, vector<64x128xf32>
    tpu.vector_store %arg16[%c0_5, %c0_6], %5 {strides = array<i32>} : memref<64x128xf32, #tpu.memory_space<vmem>>, vector<64x128xf32>,
    %c0_7 = arith.constant 0 : index
    %c0_8 = arith.constant 0 : index
    %7 = vector.load %arg5[%c0_7, %c0_8] : memref<8x128xf32, #tpu.memory_space<vmem>>, vector<8x128xf32>
    %c0_9 = arith.constant 0 : index
    %c0_10 = arith.constant 0 : index
    %8 = vector.load %arg7[%c0_9, %c0_10] : memref<32x8xf32, #tpu.memory_space<vmem>>, vector<32x8xf32>
    %c0_11 = arith.constant 0 : index
    %c0_12 = arith.constant 0 : index
    %9 = vector.load %arg8[%c0_11, %c0_12] : memref<16x128xf32, #tpu.memory_space<vmem>>, vector<16x128xf32>
    %c0_13 = arith.constant 0 : index
    %c0_14 = arith.constant 0 : index
    %10 = vector.load %arg9[%c0_13, %c0_14] : memref<1x128xf32, #tpu.memory_space<vmem>>, vector<1x128xf32>
    %c0_15 = arith.constant 0 : index
    %c0_16 = arith.constant 0 : index
    %11 = vector.load %arg10[%c0_15, %c0_16] : memref<32x8xf32, #tpu.memory_space<vmem>>, vector<32x8xf32>
    %c0_17 = arith.constant 0 : index
    %c0_18 = arith.constant 0 : index
    %c0_19 = arith.constant 0 : index
    %12 = vector.load %arg2[%c0_17, %c0_18, %c0_19] : memref<2x8x8xf32, #tpu.memory_space<vmem>>, vector<1x8x8xf32>
    %13 = vector.shape_cast %12 : vector<1x8x8xf32> to vector<8x8xf32>
    %c1 = arith.constant 1 : index
    %c0_20 = arith.constant 0 : index
    %c0_21 = arith.constant 0 : index
    %14 = vector.load %arg2[%c1, %c0_20, %c0_21] : memref<2x8x8xf32, #tpu.memory_space<vmem>>, vector<1x8x8xf32>
    %15 = vector.shape_cast %14 : vector<1x8x8xf32> to vector<8x8xf32>
    %c0_22 = arith.constant 0 : index
    %c0_23 = arith.constant 0 : index
    %c0_24 = arith.constant 0 : index
    %16 = vector.load %arg3[%c0_22, %c0_23, %c0_24] : memref<2x8x32xf32, #tpu.memory_space<vmem>>, vector<1x8x32xf32>
    %17 = vector.shape_cast %16 : vector<1x8x32xf32> to vector<8x32xf32>
    %c1_25 = arith.constant 1 : index
    %c0_26 = arith.constant 0 : index
    %c0_27 = arith.constant 0 : index
    %18 = vector.load %arg3[%c1_25, %c0_26, %c0_27] : memref<2x8x32xf32, #tpu.memory_space<vmem>>, vector<1x8x32xf32>
    %19 = vector.shape_cast %18 : vector<1x8x32xf32> to vector<8x32xf32>
    %c0_i32 = arith.constant 0 : i32
    %c8_i32 = arith.constant 8 : i32
    %20 = arith.muli %c0_i32, %c8_i32 : i32
    %21 = tpu.assume_multiple %20, 8 : i32
    %22 = arith.index_cast %21 : i32 to index
    %c0_28 = arith.constant 0 : index
    %23 = vector.load %arg16[%22, %c0_28] : memref<64x128xf32, #tpu.memory_space<vmem>>, vector<8x128xf32>
    %cst_29 = arith.constant dense<0.000000e+00> : vector<8x128xf32>
    %24 = tpu.matmul %13, %7, %cst_29 {dimension_numbers = #tpu.dot_dimension_numbers<[1], [0], [0], [1], [0, 0, 1, 1], [], []>} : vector<8x8xf32>, vector<8x128xf32>, vector<8x128xf32> -> vector<8x128xf32>
    %25 = arith.addf %23, %24 : vector<8x128xf32>
    %26 = vector.extract_strided_slice %25 {offsets = [0, 0], sizes = [8, 96], strides = [1, 1]} : vector<8x128xf32> to vector<8x96xf32>
    %27 = arith.negf %26 : vector<8x96xf32>
    %28 = math.exp %27 : vector<8x96xf32>
    %cst_30 = arith.constant 1.000000e+00 : f32
    %29 = vector.broadcast %cst_30 : f32 to vector<8x96xf32>
    %30 = arith.addf %29, %28 : vector<8x96xf32>
    %31 = arith.divf %29, %30 : vector<8x96xf32>
    %32 = vector.extract_strided_slice %25 {offsets = [0, 96], sizes = [8, 32], strides = [1, 1]} : vector<8x128xf32> to vector<8x32xf32>
    %33 = math.tanh %32 : vector<8x32xf32>
    %34 = vector.extract_strided_slice %31 {offsets = [0, 0], sizes = [8, 32], strides = [1, 1]} : vector<8x96xf32> to vector<8x32xf32>
    %35 = vector.extract_strided_slice %31 {offsets = [0, 32], sizes = [8, 32], strides = [1, 1]} : vector<8x96xf32> to vector<8x32xf32>
    %36 = vector.extract_strided_slice %31 {offsets = [0, 64], sizes = [8, 32], strides = [1, 1]} : vector<8x96xf32> to vector<8x32xf32>
    %37 = arith.mulf %35, %17 : vector<8x32xf32>
    %38 = arith.mulf %34, %33 : vector<8x32xf32>
    %39 = arith.addf %37, %38 : vector<8x32xf32>
    %40 = math.tanh %39 : vector<8x32xf32>
    %41 = arith.mulf %36, %40 : vector<8x32xf32>
    %cst_31 = arith.constant dense<0.000000e+00> : vector<8x8xf32>
    %42 = tpu.matmul %41, %8, %cst_31 {dimension_numbers = #tpu.dot_dimension_numbers<[1], [0], [0], [1], [0, 0, 1, 1], [], []>} : vector<8x32xf32>, vector<32x8xf32>, vector<8x8xf32> -> vector<8x8xf32>
    %43 = tpu.concatenate %42, %15 in 1 : vector<8x8xf32>, vector<8x8xf32> -> vector<8x16xf32>
    %cst_32 = arith.constant dense<0.000000e+00> : vector<8x128xf32>
    %44 = tpu.matmul %43, %9, %cst_32 {dimension_numbers = #tpu.dot_dimension_numbers<[1], [0], [0], [1], [0, 0, 1, 1], [], []>} : vector<8x16xf32>, vector<16x128xf32>, vector<8x128xf32> -> vector<8x128xf32>
    %45 = vector.broadcast %10 : vector<1x128xf32> to vector<8x128xf32>
    %46 = arith.addf %44, %45 : vector<8x128xf32>
    %47 = vector.extract_strided_slice %46 {offsets = [0, 0], sizes = [8, 96], strides = [1, 1]} : vector<8x128xf32> to vector<8x96xf32>
    %48 = arith.negf %47 : vector<8x96xf32>
    %49 = math.exp %48 : vector<8x96xf32>
    %cst_33 = arith.constant 1.000000e+00 : f32
    %50 = vector.broadcast %cst_33 : f32 to vector<8x96xf32>
    %51 = arith.addf %50, %49 : vector<8x96xf32>
    %52 = arith.divf %50, %51 : vector<8x96xf32>
    %53 = vector.extract_strided_slice %46 {offsets = [0, 96], sizes = [8, 32], strides = [1, 1]} : vector<8x128xf32> to vector<8x32xf32>
    %54 = math.tanh %53 : vector<8x32xf32>
    %55 = vector.extract_strided_slice %52 {offsets = [0, 0], sizes = [8, 32], strides = [1, 1]} : vector<8x96xf32> to vector<8x32xf32>
    %56 = vector.extract_strided_slice %52 {offsets = [0, 32], sizes = [8, 32], strides = [1, 1]} : vector<8x96xf32> to vector<8x32xf32>
    %57 = vector.extract_strided_slice %52 {offsets = [0, 64], sizes = [8, 32], strides = [1, 1]} : vector<8x96xf32> to vector<8x32xf32>
    %58 = arith.mulf %56, %19 : vector<8x32xf32>
    %59 = arith.mulf %55, %54 : vector<8x32xf32>
    %60 = arith.addf %58, %59 : vector<8x32xf32>
    %61 = math.tanh %60 : vector<8x32xf32>
    %62 = arith.mulf %57, %61 : vector<8x32xf32>
    %cst_34 = arith.constant dense<0.000000e+00> : vector<8x8xf32>
    %63 = tpu.matmul %62, %11, %cst_34 {dimension_numbers = #tpu.dot_dimension_numbers<[1], [0], [0], [1], [0, 0, 1, 1], [], []>} : vector<8x32xf32>, vector<32x8xf32>, vector<8x8xf32> -> vector<8x8xf32>
    %64 = arith.index_cast %21 : i32 to index
    %c0_35 = arith.constant 0 : index
    %65 = vector.load %arg17[%64, %c0_35] : memref<64x8xf32, #tpu.memory_space<vmem>>, vector<8x8xf32>
    tpu.vector_store %arg17[%64, %c0_35], %63 {strides = array<i32>} : memref<64x8xf32, #tpu.memory_space<vmem>>, vector<8x8xf32>,
    %c1_i32 = arith.constant 1 : i32
    %c8_i32_36 = arith.constant 8 : i32
    %66 = arith.muli %c1_i32, %c8_i32_36 : i32
    %67 = tpu.assume_multiple %66, 8 : i32
    %68 = arith.index_cast %67 : i32 to index
    %c0_37 = arith.constant 0 : index
    %69 = vector.load %arg16[%68, %c0_37] : memref<64x128xf32, #tpu.memory_space<vmem>>, vector<8x128xf32>
    %cst_38 = arith.constant dense<0.000000e+00> : vector<8x128xf32>
    %70 = tpu.matmul %42, %7, %cst_38 {dimension_numbers = #tpu.dot_dimension_numbers<[1], [0], [0], [1], [0, 0, 1, 1], [], []>} : vector<8x8xf32>, vector<8x128xf32>, vector<8x128xf32> -> vector<8x128xf32>
    %71 = arith.addf %69, %70 : vector<8x128xf32>
    %72 = vector.extract_strided_slice %71 {offsets = [0, 0], sizes = [8, 96], strides = [1, 1]} : vector<8x128xf32> to vector<8x96xf32>
    %73 = arith.negf %72 : vector<8x96xf32>
    %74 = math.exp %73 : vector<8x96xf32>
    %cst_39 = arith.constant 1.000000e+00 : f32
    %75 = vector.broadcast %cst_39 : f32 to vector<8x96xf32>
    %76 = arith.addf %75, %74 : vector<8x96xf32>
    %77 = arith.divf %75, %76 : vector<8x96xf32>
    %78 = vector.extract_strided_slice %71 {offsets = [0, 96], sizes = [8, 32], strides = [1, 1]} : vector<8x128xf32> to vector<8x32xf32>
    %79 = math.tanh %78 : vector<8x32xf32>
    %80 = vector.extract_strided_slice %77 {offsets = [0, 0], sizes = [8, 32], strides = [1, 1]} : vector<8x96xf32> to vector<8x32xf32>
    %81 = vector.extract_strided_slice %77 {offsets = [0, 32], sizes = [8, 32], strides = [1, 1]} : vector<8x96xf32> to vector<8x32xf32>
    %82 = vector.extract_strided_slice %77 {offsets = [0, 64], sizes = [8, 32], strides = [1, 1]} : vector<8x96xf32> to vector<8x32xf32>
    %83 = arith.mulf %81, %39 : vector<8x32xf32>
    %84 = arith.mulf %80, %79 : vector<8x32xf32>
    %85 = arith.addf %83, %84 : vector<8x32xf32>
    %86 = math.tanh %85 : vector<8x32xf32>
    %87 = arith.mulf %82, %86 : vector<8x32xf32>
    %cst_40 = arith.constant dense<0.000000e+00> : vector<8x8xf32>
    %88 = tpu.matmul %87, %8, %cst_40 {dimension_numbers = #tpu.dot_dimension_numbers<[1], [0], [0], [1], [0, 0, 1, 1], [], []>} : vector<8x32xf32>, vector<32x8xf32>, vector<8x8xf32> -> vector<8x8xf32>
    %89 = tpu.concatenate %88, %63 in 1 : vector<8x8xf32>, vector<8x8xf32> -> vector<8x16xf32>
    %cst_41 = arith.constant dense<0.000000e+00> : vector<8x128xf32>
    %90 = tpu.matmul %89, %9, %cst_41 {dimension_numbers = #tpu.dot_dimension_numbers<[1], [0], [0], [1], [0, 0, 1, 1], [], []>} : vector<8x16xf32>, vector<16x128xf32>, vector<8x128xf32> -> vector<8x128xf32>
    %91 = vector.broadcast %10 : vector<1x128xf32> to vector<8x128xf32>
    %92 = arith.addf %90, %91 : vector<8x128xf32>
    %93 = vector.extract_strided_slice %92 {offsets = [0, 0], sizes = [8, 96], strides = [1, 1]} : vector<8x128xf32> to vector<8x96xf32>
    %94 = arith.negf %93 : vector<8x96xf32>
    %95 = math.exp %94 : vector<8x96xf32>
    %cst_42 = arith.constant 1.000000e+00 : f32
    %96 = vector.broadcast %cst_42 : f32 to vector<8x96xf32>
    %97 = arith.addf %96, %95 : vector<8x96xf32>
    %98 = arith.divf %96, %97 : vector<8x96xf32>
    %99 = vector.extract_strided_slice %92 {offsets = [0, 96], sizes = [8, 32], strides = [1, 1]} : vector<8x128xf32> to vector<8x32xf32>
    %100 = math.tanh %99 : vector<8x32xf32>
    %101 = vector.extract_strided_slice %98 {offsets = [0, 0], sizes = [8, 32], strides = [1, 1]} : vector<8x96xf32> to vector<8x32xf32>
    %102 = vector.extract_strided_slice %98 {offsets = [0, 32], sizes = [8, 32], strides = [1, 1]} : vector<8x96xf32> to vector<8x32xf32>
    %103 = vector.extract_strided_slice %98 {offsets = [0, 64], sizes = [8, 32], strides = [1, 1]} : vector<8x96xf32> to vector<8x32xf32>
    %104 = arith.mulf %102, %60 : vector<8x32xf32>
    %105 = arith.mulf %101, %100 : vector<8x32xf32>
    %106 = arith.addf %104, %105 : vector<8x32xf32>
    %107 = math.tanh %106 : vector<8x32xf32>
    %108 = arith.mulf %103, %107 : vector<8x32xf32>
    %cst_43 = arith.constant dense<0.000000e+00> : vector<8x8xf32>
    %109 = tpu.matmul %108, %11, %cst_43 {dimension_numbers = #tpu.dot_dimension_numbers<[1], [0], [0], [1], [0, 0, 1, 1], [], []>} : vector<8x32xf32>, vector<32x8xf32>, vector<8x8xf32> -> vector<8x8xf32>
    %110 = arith.index_cast %67 : i32 to index
    %c0_44 = arith.constant 0 : index
    %111 = vector.load %arg17[%110, %c0_44] : memref<64x8xf32, #tpu.memory_space<vmem>>, vector<8x8xf32>
    tpu.vector_store %arg17[%110, %c0_44], %109 {strides = array<i32>} : memref<64x8xf32, #tpu.memory_space<vmem>>, vector<8x8xf32>,
    %c2_i32 = arith.constant 2 : i32
    %c8_i32_45 = arith.constant 8 : i32
    %112 = arith.muli %c2_i32, %c8_i32_45 : i32
    %113 = tpu.assume_multiple %112, 8 : i32
    %114 = arith.index_cast %113 : i32 to index
    %c0_46 = arith.constant 0 : index
    %115 = vector.load %arg16[%114, %c0_46] : memref<64x128xf32, #tpu.memory_space<vmem>>, vector<8x128xf32>
    %cst_47 = arith.constant dense<0.000000e+00> : vector<8x128xf32>
    %116 = tpu.matmul %88, %7, %cst_47 {dimension_numbers = #tpu.dot_dimension_numbers<[1], [0], [0], [1], [0, 0, 1, 1], [], []>} : vector<8x8xf32>, vector<8x128xf32>, vector<8x128xf32> -> vector<8x128xf32>
    %117 = arith.addf %115, %116 : vector<8x128xf32>
    %118 = vector.extract_strided_slice %117 {offsets = [0, 0], sizes = [8, 96], strides = [1, 1]} : vector<8x128xf32> to vector<8x96xf32>
    %119 = arith.negf %118 : vector<8x96xf32>
    %120 = math.exp %119 : vector<8x96xf32>
    %cst_48 = arith.constant 1.000000e+00 : f32
    %121 = vector.broadcast %cst_48 : f32 to vector<8x96xf32>
    %122 = arith.addf %121, %120 : vector<8x96xf32>
    %123 = arith.divf %121, %122 : vector<8x96xf32>
    %124 = vector.extract_strided_slice %117 {offsets = [0, 96], sizes = [8, 32], strides = [1, 1]} : vector<8x128xf32> to vector<8x32xf32>
    %125 = math.tanh %124 : vector<8x32xf32>
    %126 = vector.extract_strided_slice %123 {offsets = [0, 0], sizes = [8, 32], strides = [1, 1]} : vector<8x96xf32> to vector<8x32xf32>
    %127 = vector.extract_strided_slice %123 {offsets = [0, 32], sizes = [8, 32], strides = [1, 1]} : vector<8x96xf32> to vector<8x32xf32>
    %128 = vector.extract_strided_slice %123 {offsets = [0, 64], sizes = [8, 32], strides = [1, 1]} : vector<8x96xf32> to vector<8x32xf32>
    %129 = arith.mulf %127, %85 : vector<8x32xf32>
    %130 = arith.mulf %126, %125 : vector<8x32xf32>
    %131 = arith.addf %129, %130 : vector<8x32xf32>
    %132 = math.tanh %131 : vector<8x32xf32>
    %133 = arith.mulf %128, %132 : vector<8x32xf32>
    %cst_49 = arith.constant dense<0.000000e+00> : vector<8x8xf32>
    %134 = tpu.matmul %133, %8, %cst_49 {dimension_numbers = #tpu.dot_dimension_numbers<[1], [0], [0], [1], [0, 0, 1, 1], [], []>} : vector<8x32xf32>, vector<32x8xf32>, vector<8x8xf32> -> vector<8x8xf32>
    %135 = tpu.concatenate %134, %109 in 1 : vector<8x8xf32>, vector<8x8xf32> -> vector<8x16xf32>
    %cst_50 = arith.constant dense<0.000000e+00> : vector<8x128xf32>
    %136 = tpu.matmul %135, %9, %cst_50 {dimension_numbers = #tpu.dot_dimension_numbers<[1], [0], [0], [1], [0, 0, 1, 1], [], []>} : vector<8x16xf32>, vector<16x128xf32>, vector<8x128xf32> -> vector<8x128xf32>
    %137 = vector.broadcast %10 : vector<1x128xf32> to vector<8x128xf32>
    %138 = arith.addf %136, %137 : vector<8x128xf32>
    %139 = vector.extract_strided_slice %138 {offsets = [0, 0], sizes = [8, 96], strides = [1, 1]} : vector<8x128xf32> to vector<8x96xf32>
    %140 = arith.negf %139 : vector<8x96xf32>
    %141 = math.exp %140 : vector<8x96xf32>
    %cst_51 = arith.constant 1.000000e+00 : f32
    %142 = vector.broadcast %cst_51 : f32 to vector<8x96xf32>
    %143 = arith.addf %142, %141 : vector<8x96xf32>
    %144 = arith.divf %142, %143 : vector<8x96xf32>
    %145 = vector.extract_strided_slice %138 {offsets = [0, 96], sizes = [8, 32], strides = [1, 1]} : vector<8x128xf32> to vector<8x32xf32>
    %146 = math.tanh %145 : vector<8x32xf32>
    %147 = vector.extract_strided_slice %144 {offsets = [0, 0], sizes = [8, 32], strides = [1, 1]} : vector<8x96xf32> to vector<8x32xf32>
    %148 = vector.extract_strided_slice %144 {offsets = [0, 32], sizes = [8, 32], strides = [1, 1]} : vector<8x96xf32> to vector<8x32xf32>
    %149 = vector.extract_strided_slice %144 {offsets = [0, 64], sizes = [8, 32], strides = [1, 1]} : vector<8x96xf32> to vector<8x32xf32>
    %150 = arith.mulf %148, %106 : vector<8x32xf32>
    %151 = arith.mulf %147, %146 : vector<8x32xf32>
    %152 = arith.addf %150, %151 : vector<8x32xf32>
    %153 = math.tanh %152 : vector<8x32xf32>
    %154 = arith.mulf %149, %153 : vector<8x32xf32>
    %cst_52 = arith.constant dense<0.000000e+00> : vector<8x8xf32>
    %155 = tpu.matmul %154, %11, %cst_52 {dimension_numbers = #tpu.dot_dimension_numbers<[1], [0], [0], [1], [0, 0, 1, 1], [], []>} : vector<8x32xf32>, vector<32x8xf32>, vector<8x8xf32> -> vector<8x8xf32>
    %156 = arith.index_cast %113 : i32 to index
    %c0_53 = arith.constant 0 : index
    %157 = vector.load %arg17[%156, %c0_53] : memref<64x8xf32, #tpu.memory_space<vmem>>, vector<8x8xf32>
    tpu.vector_store %arg17[%156, %c0_53], %155 {strides = array<i32>} : memref<64x8xf32, #tpu.memory_space<vmem>>, vector<8x8xf32>,
    %c3_i32 = arith.constant 3 : i32
    %c8_i32_54 = arith.constant 8 : i32
    %158 = arith.muli %c3_i32, %c8_i32_54 : i32
    %159 = tpu.assume_multiple %158, 8 : i32
    %160 = arith.index_cast %159 : i32 to index
    %c0_55 = arith.constant 0 : index
    %161 = vector.load %arg16[%160, %c0_55] : memref<64x128xf32, #tpu.memory_space<vmem>>, vector<8x128xf32>
    %cst_56 = arith.constant dense<0.000000e+00> : vector<8x128xf32>
    %162 = tpu.matmul %134, %7, %cst_56 {dimension_numbers = #tpu.dot_dimension_numbers<[1], [0], [0], [1], [0, 0, 1, 1], [], []>} : vector<8x8xf32>, vector<8x128xf32>, vector<8x128xf32> -> vector<8x128xf32>
    %163 = arith.addf %161, %162 : vector<8x128xf32>
    %164 = vector.extract_strided_slice %163 {offsets = [0, 0], sizes = [8, 96], strides = [1, 1]} : vector<8x128xf32> to vector<8x96xf32>
    %165 = arith.negf %164 : vector<8x96xf32>
    %166 = math.exp %165 : vector<8x96xf32>
    %cst_57 = arith.constant 1.000000e+00 : f32
    %167 = vector.broadcast %cst_57 : f32 to vector<8x96xf32>
    %168 = arith.addf %167, %166 : vector<8x96xf32>
    %169 = arith.divf %167, %168 : vector<8x96xf32>
    %170 = vector.extract_strided_slice %163 {offsets = [0, 96], sizes = [8, 32], strides = [1, 1]} : vector<8x128xf32> to vector<8x32xf32>
    %171 = math.tanh %170 : vector<8x32xf32>
    %172 = vector.extract_strided_slice %169 {offsets = [0, 0], sizes = [8, 32], strides = [1, 1]} : vector<8x96xf32> to vector<8x32xf32>
    %173 = vector.extract_strided_slice %169 {offsets = [0, 32], sizes = [8, 32], strides = [1, 1]} : vector<8x96xf32> to vector<8x32xf32>
    %174 = vector.extract_strided_slice %169 {offsets = [0, 64], sizes = [8, 32], strides = [1, 1]} : vector<8x96xf32> to vector<8x32xf32>
    %175 = arith.mulf %173, %131 : vector<8x32xf32>
    %176 = arith.mulf %172, %171 : vector<8x32xf32>
    %177 = arith.addf %175, %176 : vector<8x32xf32>
    %178 = math.tanh %177 : vector<8x32xf32>
    %179 = arith.mulf %174, %178 : vector<8x32xf32>
    %cst_58 = arith.constant dense<0.000000e+00> : vector<8x8xf32>
    %180 = tpu.matmul %179, %8, %cst_58 {dimension_numbers = #tpu.dot_dimension_numbers<[1], [0], [0], [1], [0, 0, 1, 1], [], []>} : vector<8x32xf32>, vector<32x8xf32>, vector<8x8xf32> -> vector<8x8xf32>
    %181 = tpu.concatenate %180, %155 in 1 : vector<8x8xf32>, vector<8x8xf32> -> vector<8x16xf32>
    %cst_59 = arith.constant dense<0.000000e+00> : vector<8x128xf32>
    %182 = tpu.matmul %181, %9, %cst_59 {dimension_numbers = #tpu.dot_dimension_numbers<[1], [0], [0], [1], [0, 0, 1, 1], [], []>} : vector<8x16xf32>, vector<16x128xf32>, vector<8x128xf32> -> vector<8x128xf32>
    %183 = vector.broadcast %10 : vector<1x128xf32> to vector<8x128xf32>
    %184 = arith.addf %182, %183 : vector<8x128xf32>
    %185 = vector.extract_strided_slice %184 {offsets = [0, 0], sizes = [8, 96], strides = [1, 1]} : vector<8x128xf32> to vector<8x96xf32>
    %186 = arith.negf %185 : vector<8x96xf32>
    %187 = math.exp %186 : vector<8x96xf32>
    %cst_60 = arith.constant 1.000000e+00 : f32
    %188 = vector.broadcast %cst_60 : f32 to vector<8x96xf32>
    %189 = arith.addf %188, %187 : vector<8x96xf32>
    %190 = arith.divf %188, %189 : vector<8x96xf32>
    %191 = vector.extract_strided_slice %184 {offsets = [0, 96], sizes = [8, 32], strides = [1, 1]} : vector<8x128xf32> to vector<8x32xf32>
    %192 = math.tanh %191 : vector<8x32xf32>
    %193 = vector.extract_strided_slice %190 {offsets = [0, 0], sizes = [8, 32], strides = [1, 1]} : vector<8x96xf32> to vector<8x32xf32>
    %194 = vector.extract_strided_slice %190 {offsets = [0, 32], sizes = [8, 32], strides = [1, 1]} : vector<8x96xf32> to vector<8x32xf32>
    %195 = vector.extract_strided_slice %190 {offsets = [0, 64], sizes = [8, 32], strides = [1, 1]} : vector<8x96xf32> to vector<8x32xf32>
    %196 = arith.mulf %194, %152 : vector<8x32xf32>
    %197 = arith.mulf %193, %192 : vector<8x32xf32>
    %198 = arith.addf %196, %197 : vector<8x32xf32>
    %199 = math.tanh %198 : vector<8x32xf32>
    %200 = arith.mulf %195, %199 : vector<8x32xf32>
    %cst_61 = arith.constant dense<0.000000e+00> : vector<8x8xf32>
    %201 = tpu.matmul %200, %11, %cst_61 {dimension_numbers = #tpu.dot_dimension_numbers<[1], [0], [0], [1], [0, 0, 1, 1], [], []>} : vector<8x32xf32>, vector<32x8xf32>, vector<8x8xf32> -> vector<8x8xf32>
    %202 = arith.index_cast %159 : i32 to index
    %c0_62 = arith.constant 0 : index
    %203 = vector.load %arg17[%202, %c0_62] : memref<64x8xf32, #tpu.memory_space<vmem>>, vector<8x8xf32>
    tpu.vector_store %arg17[%202, %c0_62], %201 {strides = array<i32>} : memref<64x8xf32, #tpu.memory_space<vmem>>, vector<8x8xf32>,
    %c4_i32 = arith.constant 4 : i32
    %c8_i32_63 = arith.constant 8 : i32
    %204 = arith.muli %c4_i32, %c8_i32_63 : i32
    %205 = tpu.assume_multiple %204, 8 : i32
    %206 = arith.index_cast %205 : i32 to index
    %c0_64 = arith.constant 0 : index
    %207 = vector.load %arg16[%206, %c0_64] : memref<64x128xf32, #tpu.memory_space<vmem>>, vector<8x128xf32>
    %cst_65 = arith.constant dense<0.000000e+00> : vector<8x128xf32>
    %208 = tpu.matmul %180, %7, %cst_65 {dimension_numbers = #tpu.dot_dimension_numbers<[1], [0], [0], [1], [0, 0, 1, 1], [], []>} : vector<8x8xf32>, vector<8x128xf32>, vector<8x128xf32> -> vector<8x128xf32>
    %209 = arith.addf %207, %208 : vector<8x128xf32>
    %210 = vector.extract_strided_slice %209 {offsets = [0, 0], sizes = [8, 96], strides = [1, 1]} : vector<8x128xf32> to vector<8x96xf32>
    %211 = arith.negf %210 : vector<8x96xf32>
    %212 = math.exp %211 : vector<8x96xf32>
    %cst_66 = arith.constant 1.000000e+00 : f32
    %213 = vector.broadcast %cst_66 : f32 to vector<8x96xf32>
    %214 = arith.addf %213, %212 : vector<8x96xf32>
    %215 = arith.divf %213, %214 : vector<8x96xf32>
    %216 = vector.extract_strided_slice %209 {offsets = [0, 96], sizes = [8, 32], strides = [1, 1]} : vector<8x128xf32> to vector<8x32xf32>
    %217 = math.tanh %216 : vector<8x32xf32>
    %218 = vector.extract_strided_slice %215 {offsets = [0, 0], sizes = [8, 32], strides = [1, 1]} : vector<8x96xf32> to vector<8x32xf32>
    %219 = vector.extract_strided_slice %215 {offsets = [0, 32], sizes = [8, 32], strides = [1, 1]} : vector<8x96xf32> to vector<8x32xf32>
    %220 = vector.extract_strided_slice %215 {offsets = [0, 64], sizes = [8, 32], strides = [1, 1]} : vector<8x96xf32> to vector<8x32xf32>
    %221 = arith.mulf %219, %177 : vector<8x32xf32>
    %222 = arith.mulf %218, %217 : vector<8x32xf32>
    %223 = arith.addf %221, %222 : vector<8x32xf32>
    %224 = math.tanh %223 : vector<8x32xf32>
    %225 = arith.mulf %220, %224 : vector<8x32xf32>
    %cst_67 = arith.constant dense<0.000000e+00> : vector<8x8xf32>
    %226 = tpu.matmul %225, %8, %cst_67 {dimension_numbers = #tpu.dot_dimension_numbers<[1], [0], [0], [1], [0, 0, 1, 1], [], []>} : vector<8x32xf32>, vector<32x8xf32>, vector<8x8xf32> -> vector<8x8xf32>
    %227 = tpu.concatenate %226, %201 in 1 : vector<8x8xf32>, vector<8x8xf32> -> vector<8x16xf32>
    %cst_68 = arith.constant dense<0.000000e+00> : vector<8x128xf32>
    %228 = tpu.matmul %227, %9, %cst_68 {dimension_numbers = #tpu.dot_dimension_numbers<[1], [0], [0], [1], [0, 0, 1, 1], [], []>} : vector<8x16xf32>, vector<16x128xf32>, vector<8x128xf32> -> vector<8x128xf32>
    %229 = vector.broadcast %10 : vector<1x128xf32> to vector<8x128xf32>
    %230 = arith.addf %228, %229 : vector<8x128xf32>
    %231 = vector.extract_strided_slice %230 {offsets = [0, 0], sizes = [8, 96], strides = [1, 1]} : vector<8x128xf32> to vector<8x96xf32>
    %232 = arith.negf %231 : vector<8x96xf32>
    %233 = math.exp %232 : vector<8x96xf32>
    %cst_69 = arith.constant 1.000000e+00 : f32
    %234 = vector.broadcast %cst_69 : f32 to vector<8x96xf32>
    %235 = arith.addf %234, %233 : vector<8x96xf32>
    %236 = arith.divf %234, %235 : vector<8x96xf32>
    %237 = vector.extract_strided_slice %230 {offsets = [0, 96], sizes = [8, 32], strides = [1, 1]} : vector<8x128xf32> to vector<8x32xf32>
    %238 = math.tanh %237 : vector<8x32xf32>
    %239 = vector.extract_strided_slice %236 {offsets = [0, 0], sizes = [8, 32], strides = [1, 1]} : vector<8x96xf32> to vector<8x32xf32>
    %240 = vector.extract_strided_slice %236 {offsets = [0, 32], sizes = [8, 32], strides = [1, 1]} : vector<8x96xf32> to vector<8x32xf32>
    %241 = vector.extract_strided_slice %236 {offsets = [0, 64], sizes = [8, 32], strides = [1, 1]} : vector<8x96xf32> to vector<8x32xf32>
    %242 = arith.mulf %240, %198 : vector<8x32xf32>
    %243 = arith.mulf %239, %238 : vector<8x32xf32>
    %244 = arith.addf %242, %243 : vector<8x32xf32>
    %245 = math.tanh %244 : vector<8x32xf32>
    %246 = arith.mulf %241, %245 : vector<8x32xf32>
    %cst_70 = arith.constant dense<0.000000e+00> : vector<8x8xf32>
    %247 = tpu.matmul %246, %11, %cst_70 {dimension_numbers = #tpu.dot_dimension_numbers<[1], [0], [0], [1], [0, 0, 1, 1], [], []>} : vector<8x32xf32>, vector<32x8xf32>, vector<8x8xf32> -> vector<8x8xf32>
    %248 = arith.index_cast %205 : i32 to index
    %c0_71 = arith.constant 0 : index
    %249 = vector.load %arg17[%248, %c0_71] : memref<64x8xf32, #tpu.memory_space<vmem>>, vector<8x8xf32>
    tpu.vector_store %arg17[%248, %c0_71], %247 {strides = array<i32>} : memref<64x8xf32, #tpu.memory_space<vmem>>, vector<8x8xf32>,
    %c5_i32 = arith.constant 5 : i32
    %c8_i32_72 = arith.constant 8 : i32
    %250 = arith.muli %c5_i32, %c8_i32_72 : i32
    %251 = tpu.assume_multiple %250, 8 : i32
    %252 = arith.index_cast %251 : i32 to index
    %c0_73 = arith.constant 0 : index
    %253 = vector.load %arg16[%252, %c0_73] : memref<64x128xf32, #tpu.memory_space<vmem>>, vector<8x128xf32>
    %cst_74 = arith.constant dense<0.000000e+00> : vector<8x128xf32>
    %254 = tpu.matmul %226, %7, %cst_74 {dimension_numbers = #tpu.dot_dimension_numbers<[1], [0], [0], [1], [0, 0, 1, 1], [], []>} : vector<8x8xf32>, vector<8x128xf32>, vector<8x128xf32> -> vector<8x128xf32>
    %255 = arith.addf %253, %254 : vector<8x128xf32>
    %256 = vector.extract_strided_slice %255 {offsets = [0, 0], sizes = [8, 96], strides = [1, 1]} : vector<8x128xf32> to vector<8x96xf32>
    %257 = arith.negf %256 : vector<8x96xf32>
    %258 = math.exp %257 : vector<8x96xf32>
    %cst_75 = arith.constant 1.000000e+00 : f32
    %259 = vector.broadcast %cst_75 : f32 to vector<8x96xf32>
    %260 = arith.addf %259, %258 : vector<8x96xf32>
    %261 = arith.divf %259, %260 : vector<8x96xf32>
    %262 = vector.extract_strided_slice %255 {offsets = [0, 96], sizes = [8, 32], strides = [1, 1]} : vector<8x128xf32> to vector<8x32xf32>
    %263 = math.tanh %262 : vector<8x32xf32>
    %264 = vector.extract_strided_slice %261 {offsets = [0, 0], sizes = [8, 32], strides = [1, 1]} : vector<8x96xf32> to vector<8x32xf32>
    %265 = vector.extract_strided_slice %261 {offsets = [0, 32], sizes = [8, 32], strides = [1, 1]} : vector<8x96xf32> to vector<8x32xf32>
    %266 = vector.extract_strided_slice %261 {offsets = [0, 64], sizes = [8, 32], strides = [1, 1]} : vector<8x96xf32> to vector<8x32xf32>
    %267 = arith.mulf %265, %223 : vector<8x32xf32>
    %268 = arith.mulf %264, %263 : vector<8x32xf32>
    %269 = arith.addf %267, %268 : vector<8x32xf32>
    %270 = math.tanh %269 : vector<8x32xf32>
    %271 = arith.mulf %266, %270 : vector<8x32xf32>
    %cst_76 = arith.constant dense<0.000000e+00> : vector<8x8xf32>
    %272 = tpu.matmul %271, %8, %cst_76 {dimension_numbers = #tpu.dot_dimension_numbers<[1], [0], [0], [1], [0, 0, 1, 1], [], []>} : vector<8x32xf32>, vector<32x8xf32>, vector<8x8xf32> -> vector<8x8xf32>
    %273 = tpu.concatenate %272, %247 in 1 : vector<8x8xf32>, vector<8x8xf32> -> vector<8x16xf32>
    %cst_77 = arith.constant dense<0.000000e+00> : vector<8x128xf32>
    %274 = tpu.matmul %273, %9, %cst_77 {dimension_numbers = #tpu.dot_dimension_numbers<[1], [0], [0], [1], [0, 0, 1, 1], [], []>} : vector<8x16xf32>, vector<16x128xf32>, vector<8x128xf32> -> vector<8x128xf32>
    %275 = vector.broadcast %10 : vector<1x128xf32> to vector<8x128xf32>
    %276 = arith.addf %274, %275 : vector<8x128xf32>
    %277 = vector.extract_strided_slice %276 {offsets = [0, 0], sizes = [8, 96], strides = [1, 1]} : vector<8x128xf32> to vector<8x96xf32>
    %278 = arith.negf %277 : vector<8x96xf32>
    %279 = math.exp %278 : vector<8x96xf32>
    %cst_78 = arith.constant 1.000000e+00 : f32
    %280 = vector.broadcast %cst_78 : f32 to vector<8x96xf32>
    %281 = arith.addf %280, %279 : vector<8x96xf32>
    %282 = arith.divf %280, %281 : vector<8x96xf32>
    %283 = vector.extract_strided_slice %276 {offsets = [0, 96], sizes = [8, 32], strides = [1, 1]} : vector<8x128xf32> to vector<8x32xf32>
    %284 = math.tanh %283 : vector<8x32xf32>
    %285 = vector.extract_strided_slice %282 {offsets = [0, 0], sizes = [8, 32], strides = [1, 1]} : vector<8x96xf32> to vector<8x32xf32>
    %286 = vector.extract_strided_slice %282 {offsets = [0, 32], sizes = [8, 32], strides = [1, 1]} : vector<8x96xf32> to vector<8x32xf32>
    %287 = vector.extract_strided_slice %282 {offsets = [0, 64], sizes = [8, 32], strides = [1, 1]} : vector<8x96xf32> to vector<8x32xf32>
    %288 = arith.mulf %286, %244 : vector<8x32xf32>
    %289 = arith.mulf %285, %284 : vector<8x32xf32>
    %290 = arith.addf %288, %289 : vector<8x32xf32>
    %291 = math.tanh %290 : vector<8x32xf32>
    %292 = arith.mulf %287, %291 : vector<8x32xf32>
    %cst_79 = arith.constant dense<0.000000e+00> : vector<8x8xf32>
    %293 = tpu.matmul %292, %11, %cst_79 {dimension_numbers = #tpu.dot_dimension_numbers<[1], [0], [0], [1], [0, 0, 1, 1], [], []>} : vector<8x32xf32>, vector<32x8xf32>, vector<8x8xf32> -> vector<8x8xf32>
    %294 = arith.index_cast %251 : i32 to index
    %c0_80 = arith.constant 0 : index
    %295 = vector.load %arg17[%294, %c0_80] : memref<64x8xf32, #tpu.memory_space<vmem>>, vector<8x8xf32>
    tpu.vector_store %arg17[%294, %c0_80], %293 {strides = array<i32>} : memref<64x8xf32, #tpu.memory_space<vmem>>, vector<8x8xf32>,
    %c6_i32 = arith.constant 6 : i32
    %c8_i32_81 = arith.constant 8 : i32
    %296 = arith.muli %c6_i32, %c8_i32_81 : i32
    %297 = tpu.assume_multiple %296, 8 : i32
    %298 = arith.index_cast %297 : i32 to index
    %c0_82 = arith.constant 0 : index
    %299 = vector.load %arg16[%298, %c0_82] : memref<64x128xf32, #tpu.memory_space<vmem>>, vector<8x128xf32>
    %cst_83 = arith.constant dense<0.000000e+00> : vector<8x128xf32>
    %300 = tpu.matmul %272, %7, %cst_83 {dimension_numbers = #tpu.dot_dimension_numbers<[1], [0], [0], [1], [0, 0, 1, 1], [], []>} : vector<8x8xf32>, vector<8x128xf32>, vector<8x128xf32> -> vector<8x128xf32>
    %301 = arith.addf %299, %300 : vector<8x128xf32>
    %302 = vector.extract_strided_slice %301 {offsets = [0, 0], sizes = [8, 96], strides = [1, 1]} : vector<8x128xf32> to vector<8x96xf32>
    %303 = arith.negf %302 : vector<8x96xf32>
    %304 = math.exp %303 : vector<8x96xf32>
    %cst_84 = arith.constant 1.000000e+00 : f32
    %305 = vector.broadcast %cst_84 : f32 to vector<8x96xf32>
    %306 = arith.addf %305, %304 : vector<8x96xf32>
    %307 = arith.divf %305, %306 : vector<8x96xf32>
    %308 = vector.extract_strided_slice %301 {offsets = [0, 96], sizes = [8, 32], strides = [1, 1]} : vector<8x128xf32> to vector<8x32xf32>
    %309 = math.tanh %308 : vector<8x32xf32>
    %310 = vector.extract_strided_slice %307 {offsets = [0, 0], sizes = [8, 32], strides = [1, 1]} : vector<8x96xf32> to vector<8x32xf32>
    %311 = vector.extract_strided_slice %307 {offsets = [0, 32], sizes = [8, 32], strides = [1, 1]} : vector<8x96xf32> to vector<8x32xf32>
    %312 = vector.extract_strided_slice %307 {offsets = [0, 64], sizes = [8, 32], strides = [1, 1]} : vector<8x96xf32> to vector<8x32xf32>
    %313 = arith.mulf %311, %269 : vector<8x32xf32>
    %314 = arith.mulf %310, %309 : vector<8x32xf32>
    %315 = arith.addf %313, %314 : vector<8x32xf32>
    %316 = math.tanh %315 : vector<8x32xf32>
    %317 = arith.mulf %312, %316 : vector<8x32xf32>
    %cst_85 = arith.constant dense<0.000000e+00> : vector<8x8xf32>
    %318 = tpu.matmul %317, %8, %cst_85 {dimension_numbers = #tpu.dot_dimension_numbers<[1], [0], [0], [1], [0, 0, 1, 1], [], []>} : vector<8x32xf32>, vector<32x8xf32>, vector<8x8xf32> -> vector<8x8xf32>
    %319 = tpu.concatenate %318, %293 in 1 : vector<8x8xf32>, vector<8x8xf32> -> vector<8x16xf32>
    %cst_86 = arith.constant dense<0.000000e+00> : vector<8x128xf32>
    %320 = tpu.matmul %319, %9, %cst_86 {dimension_numbers = #tpu.dot_dimension_numbers<[1], [0], [0], [1], [0, 0, 1, 1], [], []>} : vector<8x16xf32>, vector<16x128xf32>, vector<8x128xf32> -> vector<8x128xf32>
    %321 = vector.broadcast %10 : vector<1x128xf32> to vector<8x128xf32>
    %322 = arith.addf %320, %321 : vector<8x128xf32>
    %323 = vector.extract_strided_slice %322 {offsets = [0, 0], sizes = [8, 96], strides = [1, 1]} : vector<8x128xf32> to vector<8x96xf32>
    %324 = arith.negf %323 : vector<8x96xf32>
    %325 = math.exp %324 : vector<8x96xf32>
    %cst_87 = arith.constant 1.000000e+00 : f32
    %326 = vector.broadcast %cst_87 : f32 to vector<8x96xf32>
    %327 = arith.addf %326, %325 : vector<8x96xf32>
    %328 = arith.divf %326, %327 : vector<8x96xf32>
    %329 = vector.extract_strided_slice %322 {offsets = [0, 96], sizes = [8, 32], strides = [1, 1]} : vector<8x128xf32> to vector<8x32xf32>
    %330 = math.tanh %329 : vector<8x32xf32>
    %331 = vector.extract_strided_slice %328 {offsets = [0, 0], sizes = [8, 32], strides = [1, 1]} : vector<8x96xf32> to vector<8x32xf32>
    %332 = vector.extract_strided_slice %328 {offsets = [0, 32], sizes = [8, 32], strides = [1, 1]} : vector<8x96xf32> to vector<8x32xf32>
    %333 = vector.extract_strided_slice %328 {offsets = [0, 64], sizes = [8, 32], strides = [1, 1]} : vector<8x96xf32> to vector<8x32xf32>
    %334 = arith.mulf %332, %290 : vector<8x32xf32>
    %335 = arith.mulf %331, %330 : vector<8x32xf32>
    %336 = arith.addf %334, %335 : vector<8x32xf32>
    %337 = math.tanh %336 : vector<8x32xf32>
    %338 = arith.mulf %333, %337 : vector<8x32xf32>
    %cst_88 = arith.constant dense<0.000000e+00> : vector<8x8xf32>
    %339 = tpu.matmul %338, %11, %cst_88 {dimension_numbers = #tpu.dot_dimension_numbers<[1], [0], [0], [1], [0, 0, 1, 1], [], []>} : vector<8x32xf32>, vector<32x8xf32>, vector<8x8xf32> -> vector<8x8xf32>
    %340 = arith.index_cast %297 : i32 to index
    %c0_89 = arith.constant 0 : index
    %341 = vector.load %arg17[%340, %c0_89] : memref<64x8xf32, #tpu.memory_space<vmem>>, vector<8x8xf32>
    tpu.vector_store %arg17[%340, %c0_89], %339 {strides = array<i32>} : memref<64x8xf32, #tpu.memory_space<vmem>>, vector<8x8xf32>,
    %c7_i32 = arith.constant 7 : i32
    %c8_i32_90 = arith.constant 8 : i32
    %342 = arith.muli %c7_i32, %c8_i32_90 : i32
    %343 = tpu.assume_multiple %342, 8 : i32
    %344 = arith.index_cast %343 : i32 to index
    %c0_91 = arith.constant 0 : index
    %345 = vector.load %arg16[%344, %c0_91] : memref<64x128xf32, #tpu.memory_space<vmem>>, vector<8x128xf32>
    %cst_92 = arith.constant dense<0.000000e+00> : vector<8x128xf32>
    %346 = tpu.matmul %318, %7, %cst_92 {dimension_numbers = #tpu.dot_dimension_numbers<[1], [0], [0], [1], [0, 0, 1, 1], [], []>} : vector<8x8xf32>, vector<8x128xf32>, vector<8x128xf32> -> vector<8x128xf32>
    %347 = arith.addf %345, %346 : vector<8x128xf32>
    %348 = vector.extract_strided_slice %347 {offsets = [0, 0], sizes = [8, 96], strides = [1, 1]} : vector<8x128xf32> to vector<8x96xf32>
    %349 = arith.negf %348 : vector<8x96xf32>
    %350 = math.exp %349 : vector<8x96xf32>
    %cst_93 = arith.constant 1.000000e+00 : f32
    %351 = vector.broadcast %cst_93 : f32 to vector<8x96xf32>
    %352 = arith.addf %351, %350 : vector<8x96xf32>
    %353 = arith.divf %351, %352 : vector<8x96xf32>
    %354 = vector.extract_strided_slice %347 {offsets = [0, 96], sizes = [8, 32], strides = [1, 1]} : vector<8x128xf32> to vector<8x32xf32>
    %355 = math.tanh %354 : vector<8x32xf32>
    %356 = vector.extract_strided_slice %353 {offsets = [0, 0], sizes = [8, 32], strides = [1, 1]} : vector<8x96xf32> to vector<8x32xf32>
    %357 = vector.extract_strided_slice %353 {offsets = [0, 32], sizes = [8, 32], strides = [1, 1]} : vector<8x96xf32> to vector<8x32xf32>
    %358 = vector.extract_strided_slice %353 {offsets = [0, 64], sizes = [8, 32], strides = [1, 1]} : vector<8x96xf32> to vector<8x32xf32>
    %359 = arith.mulf %357, %315 : vector<8x32xf32>
    %360 = arith.mulf %356, %355 : vector<8x32xf32>
    %361 = arith.addf %359, %360 : vector<8x32xf32>
    %362 = math.tanh %361 : vector<8x32xf32>
    %363 = arith.mulf %358, %362 : vector<8x32xf32>
    %cst_94 = arith.constant dense<0.000000e+00> : vector<8x8xf32>
    %364 = tpu.matmul %363, %8, %cst_94 {dimension_numbers = #tpu.dot_dimension_numbers<[1], [0], [0], [1], [0, 0, 1, 1], [], []>} : vector<8x32xf32>, vector<32x8xf32>, vector<8x8xf32> -> vector<8x8xf32>
    %365 = tpu.concatenate %364, %339 in 1 : vector<8x8xf32>, vector<8x8xf32> -> vector<8x16xf32>
    %cst_95 = arith.constant dense<0.000000e+00> : vector<8x128xf32>
    %366 = tpu.matmul %365, %9, %cst_95 {dimension_numbers = #tpu.dot_dimension_numbers<[1], [0], [0], [1], [0, 0, 1, 1], [], []>} : vector<8x16xf32>, vector<16x128xf32>, vector<8x128xf32> -> vector<8x128xf32>
    %367 = vector.broadcast %10 : vector<1x128xf32> to vector<8x128xf32>
    %368 = arith.addf %366, %367 : vector<8x128xf32>
    %369 = vector.extract_strided_slice %368 {offsets = [0, 0], sizes = [8, 96], strides = [1, 1]} : vector<8x128xf32> to vector<8x96xf32>
    %370 = arith.negf %369 : vector<8x96xf32>
    %371 = math.exp %370 : vector<8x96xf32>
    %cst_96 = arith.constant 1.000000e+00 : f32
    %372 = vector.broadcast %cst_96 : f32 to vector<8x96xf32>
    %373 = arith.addf %372, %371 : vector<8x96xf32>
    %374 = arith.divf %372, %373 : vector<8x96xf32>
    %375 = vector.extract_strided_slice %368 {offsets = [0, 96], sizes = [8, 32], strides = [1, 1]} : vector<8x128xf32> to vector<8x32xf32>
    %376 = math.tanh %375 : vector<8x32xf32>
    %377 = vector.extract_strided_slice %374 {offsets = [0, 0], sizes = [8, 32], strides = [1, 1]} : vector<8x96xf32> to vector<8x32xf32>
    %378 = vector.extract_strided_slice %374 {offsets = [0, 32], sizes = [8, 32], strides = [1, 1]} : vector<8x96xf32> to vector<8x32xf32>
    %379 = vector.extract_strided_slice %374 {offsets = [0, 64], sizes = [8, 32], strides = [1, 1]} : vector<8x96xf32> to vector<8x32xf32>
    %380 = arith.mulf %378, %336 : vector<8x32xf32>
    %381 = arith.mulf %377, %376 : vector<8x32xf32>
    %382 = arith.addf %380, %381 : vector<8x32xf32>
    %383 = math.tanh %382 : vector<8x32xf32>
    %384 = arith.mulf %379, %383 : vector<8x32xf32>
    %cst_97 = arith.constant dense<0.000000e+00> : vector<8x8xf32>
    %385 = tpu.matmul %384, %11, %cst_97 {dimension_numbers = #tpu.dot_dimension_numbers<[1], [0], [0], [1], [0, 0, 1, 1], [], []>} : vector<8x32xf32>, vector<32x8xf32>, vector<8x8xf32> -> vector<8x8xf32>
    %386 = arith.index_cast %343 : i32 to index
    %c0_98 = arith.constant 0 : index
    %387 = vector.load %arg17[%386, %c0_98] : memref<64x8xf32, #tpu.memory_space<vmem>>, vector<8x8xf32>
    tpu.vector_store %arg17[%386, %c0_98], %385 {strides = array<i32>} : memref<64x8xf32, #tpu.memory_space<vmem>>, vector<8x8xf32>,
    %c8_i32_99 = arith.constant 8 : i32
    %c0_100 = arith.constant 0 : index
    %c0_101 = arith.constant 0 : index
    %c0_102 = arith.constant 0 : index
    %388 = vector.load %arg14[%c0_100, %c0_101, %c0_102] : memref<2x8x8xf32, #tpu.memory_space<vmem>>, vector<1x8x8xf32>
    %389 = vector.shape_cast %388 : vector<1x8x8xf32> to vector<8x8xf32>
    %390 = vector.shape_cast %364 : vector<8x8xf32> to vector<1x8x8xf32>
    tpu.vector_store %arg14[%c0_100, %c0_101, %c0_102], %390 {strides = array<i32>} : memref<2x8x8xf32, #tpu.memory_space<vmem>>, vector<1x8x8xf32>,
    %c0_103 = arith.constant 0 : index
    %c0_104 = arith.constant 0 : index
    %c0_105 = arith.constant 0 : index
    %391 = vector.load %arg15[%c0_103, %c0_104, %c0_105] : memref<2x8x32xf32, #tpu.memory_space<vmem>>, vector<1x8x32xf32>
    %392 = vector.shape_cast %391 : vector<1x8x32xf32> to vector<8x32xf32>
    %393 = vector.shape_cast %361 : vector<8x32xf32> to vector<1x8x32xf32>
    tpu.vector_store %arg15[%c0_103, %c0_104, %c0_105], %393 {strides = array<i32>} : memref<2x8x32xf32, #tpu.memory_space<vmem>>, vector<1x8x32xf32>,
    %c1_106 = arith.constant 1 : index
    %c0_107 = arith.constant 0 : index
    %c0_108 = arith.constant 0 : index
    %394 = vector.load %arg14[%c1_106, %c0_107, %c0_108] : memref<2x8x8xf32, #tpu.memory_space<vmem>>, vector<1x8x8xf32>
    %395 = vector.shape_cast %394 : vector<1x8x8xf32> to vector<8x8xf32>
    %396 = vector.shape_cast %385 : vector<8x8xf32> to vector<1x8x8xf32>
    tpu.vector_store %arg14[%c1_106, %c0_107, %c0_108], %396 {strides = array<i32>} : memref<2x8x8xf32, #tpu.memory_space<vmem>>, vector<1x8x8xf32>,
    %c1_109 = arith.constant 1 : index
    %c0_110 = arith.constant 0 : index
    %c0_111 = arith.constant 0 : index
    %397 = vector.load %arg15[%c1_109, %c0_110, %c0_111] : memref<2x8x32xf32, #tpu.memory_space<vmem>>, vector<1x8x32xf32>
    %398 = vector.shape_cast %397 : vector<1x8x32xf32> to vector<8x32xf32>
    %399 = vector.shape_cast %382 : vector<8x32xf32> to vector<1x8x32xf32>
    tpu.vector_store %arg15[%c1_109, %c0_110, %c0_111], %399 {strides = array<i32>} : memref<2x8x32xf32, #tpu.memory_space<vmem>>, vector<1x8x32xf32>,
    %c0_112 = arith.constant 0 : index
    %c0_113 = arith.constant 0 : index
    %400 = vector.load %arg17[%c0_112, %c0_113] : memref<64x8xf32, #tpu.memory_space<vmem>>, vector<64x8xf32>
    %c0_114 = arith.constant 0 : index
    %c0_115 = arith.constant 0 : index
    %401 = vector.load %arg11[%c0_114, %c0_115] : memref<8x128xf32, #tpu.memory_space<vmem>>, vector<8x128xf32>
    %cst_116 = arith.constant dense<0.000000e+00> : vector<64x128xf32>
    %402 = tpu.matmul %400, %401, %cst_116 {dimension_numbers = #tpu.dot_dimension_numbers<[1], [0], [0], [1], [0, 0, 1, 1], [], []>} : vector<64x8xf32>, vector<8x128xf32>, vector<64x128xf32> -> vector<64x128xf32>
    %c0_117 = arith.constant 0 : index
    %c0_118 = arith.constant 0 : index
    %403 = vector.load %arg12[%c0_117, %c0_118] : memref<1x128xf32, #tpu.memory_space<vmem>>, vector<1x128xf32>
    %404 = vector.broadcast %403 : vector<1x128xf32> to vector<64x128xf32>
    %405 = arith.addf %402, %404 : vector<64x128xf32>
    %406 = vector.extract_strided_slice %405 {offsets = [0, 0], sizes = [64, 5], strides = [1, 1]} : vector<64x128xf32> to vector<64x5xf32>
    %407 = vector.extract_strided_slice %405 {offsets = [0, 5], sizes = [64, 40], strides = [1, 1]} : vector<64x128xf32> to vector<64x40xf32>
    %408 = vector.extract_strided_slice %405 {offsets = [0, 45], sizes = [64, 40], strides = [1, 1]} : vector<64x128xf32> to vector<64x40xf32>
    %409 = math.exp %408 : vector<64x40xf32>
    %410 = vector.shape_cast %406 : vector<64x5xf32> to vector<8x8x5xf32>
    %cst_119 = arith.constant dense<0xFF800000> : vector<8x5xf32>
    %411 = vector.multi_reduction <maximumf>, %410, %cst_119 [0] : vector<8x8x5xf32> to vector<8x5xf32>
    %412 = vector.shape_cast %411 : vector<8x5xf32> to vector<1x8x5xf32>
    %413 = vector.broadcast %412 : vector<1x8x5xf32> to vector<8x8x5xf32>
    %414 = arith.subf %410, %413 : vector<8x8x5xf32>
    %415 = math.exp %414 : vector<8x8x5xf32>
    %cst_120 = arith.constant dense<0.000000e+00> : vector<8x5xf32>
    %416 = vector.multi_reduction <add>, %415, %cst_120 [0] : vector<8x8x5xf32> to vector<8x5xf32>
    %417 = vector.shape_cast %416 : vector<8x5xf32> to vector<1x8x5xf32>
    %418 = vector.broadcast %417 : vector<1x8x5xf32> to vector<8x8x5xf32>
    %419 = arith.divf %415, %418 : vector<8x8x5xf32>
    %420 = vector.shape_cast %419 : vector<8x8x5xf32> to vector<64x5xf32>
    %cst_121 = arith.constant 0.000000e+00 : f32
    %421 = vector.broadcast %cst_121 : f32 to vector<64x43xf32>
    %422 = tpu.concatenate %420, %407, %409, %421 in 1 : vector<64x5xf32>, vector<64x40xf32>, vector<64x40xf32>, vector<64x43xf32> -> vector<64x128xf32>
    %c0_122 = arith.constant 0 : index
    %c0_123 = arith.constant 0 : index
    %423 = vector.load %arg13[%c0_122, %c0_123] : memref<64x128xf32, #tpu.memory_space<vmem>>, vector<64x128xf32>
    tpu.vector_store %arg13[%c0_122, %c0_123], %422 {strides = array<i32>} : memref<64x128xf32, #tpu.memory_space<vmem>>, vector<64x128xf32>,
    return
  }
  func.func @transform_0(%arg0: i32) -> (i32, i32) {
    %c0_i32 = arith.constant 0 : i32
    %c0_i32_0 = arith.constant 0 : i32
    %c0_i32_1 = arith.constant 0 : i32
    return %c0_i32, %c0_i32_0 : i32, i32
  }
  func.func @transform_1(%arg0: i32) -> (i32, i32, i32) {
    %c0_i32 = arith.constant 0 : i32
    %c0_i32_0 = arith.constant 0 : i32
    %c0_i32_1 = arith.constant 0 : i32
    %c0_i32_2 = arith.constant 0 : i32
    return %c0_i32, %c0_i32_0, %c0_i32_1 : i32, i32, i32
  }
  func.func @transform_2(%arg0: i32) -> (i32, i32, i32) {
    %c0_i32 = arith.constant 0 : i32
    %c0_i32_0 = arith.constant 0 : i32
    %c0_i32_1 = arith.constant 0 : i32
    %c0_i32_2 = arith.constant 0 : i32
    return %c0_i32, %c0_i32_0, %c0_i32_1 : i32, i32, i32
  }
  func.func @transform_3(%arg0: i32) -> (i32, i32) {
    %c0_i32 = arith.constant 0 : i32
    %c0_i32_0 = arith.constant 0 : i32
    %c0_i32_1 = arith.constant 0 : i32
    return %c0_i32, %c0_i32_0 : i32, i32
  }
  func.func @transform_4(%arg0: i32) -> (i32, i32) {
    %c0_i32 = arith.constant 0 : i32
    %c0_i32_0 = arith.constant 0 : i32
    %c0_i32_1 = arith.constant 0 : i32
    return %c0_i32, %c0_i32_0 : i32, i32
  }
  func.func @transform_5(%arg0: i32) -> (i32, i32) {
    %c0_i32 = arith.constant 0 : i32
    %c0_i32_0 = arith.constant 0 : i32
    %c0_i32_1 = arith.constant 0 : i32
    return %c0_i32, %c0_i32_0 : i32, i32
  }
  func.func @transform_6(%arg0: i32) -> (i32, i32) {
    %c0_i32 = arith.constant 0 : i32
    %c0_i32_0 = arith.constant 0 : i32
    %c0_i32_1 = arith.constant 0 : i32
    return %c0_i32, %c0_i32_0 : i32, i32
  }
  func.func @transform_7(%arg0: i32) -> (i32, i32) {
    %c0_i32 = arith.constant 0 : i32
    %c0_i32_0 = arith.constant 0 : i32
    %c0_i32_1 = arith.constant 0 : i32
    return %c0_i32, %c0_i32_0 : i32, i32
  }
  func.func @transform_8(%arg0: i32) -> (i32, i32) {
    %c0_i32 = arith.constant 0 : i32
    %c0_i32_0 = arith.constant 0 : i32
    %c0_i32_1 = arith.constant 0 : i32
    return %c0_i32, %c0_i32_0 : i32, i32
  }
  func.func @transform_9(%arg0: i32) -> (i32, i32) {
    %c0_i32 = arith.constant 0 : i32
    %c0_i32_0 = arith.constant 0 : i32
    %c0_i32_1 = arith.constant 0 : i32
    return %c0_i32, %c0_i32_0 : i32, i32
  }
  func.func @transform_10(%arg0: i32) -> (i32, i32) {
    %c0_i32 = arith.constant 0 : i32
    %c0_i32_0 = arith.constant 0 : i32
    %c0_i32_1 = arith.constant 0 : i32
    return %c0_i32, %c0_i32_0 : i32, i32
  }
  func.func @transform_11(%arg0: i32) -> (i32, i32) {
    %c0_i32 = arith.constant 0 : i32
    %c0_i32_0 = arith.constant 0 : i32
    %c0_i32_1 = arith.constant 0 : i32
    return %c0_i32, %c0_i32_0 : i32, i32
  }
  func.func @transform_12(%arg0: i32) -> (i32, i32) {
    %c0_i32 = arith.constant 0 : i32
    %c0_i32_0 = arith.constant 0 : i32
    %c0_i32_1 = arith.constant 0 : i32
    return %c0_i32, %c0_i32_0 : i32, i32
  }
  func.func @transform_13(%arg0: i32) -> (i32, i32, i32) {
    %c0_i32 = arith.constant 0 : i32
    %c0_i32_0 = arith.constant 0 : i32
    %c0_i32_1 = arith.constant 0 : i32
    %c0_i32_2 = arith.constant 0 : i32
    return %c0_i32, %c0_i32_0, %c0_i32_1 : i32, i32, i32
  }
  func.func @transform_14(%arg0: i32) -> (i32, i32, i32) {
    %c0_i32 = arith.constant 0 : i32
    %c0_i32_0 = arith.constant 0 : i32
    %c0_i32_1 = arith.constant 0 : i32
    %c0_i32_2 = arith.constant 0 : i32
    return %c0_i32, %c0_i32_0, %c0_i32_1 : i32, i32, i32
  }
}

</mosaic_0001>

<bundles_post_ra>
// kernel: tpu_custom_call.1
= control target key start
LH: loop header
LB: loop body
LE: loop exit
PB: predicated region body
PF: predicated region fallthrough
CT: control target
= control target key end

     0   :  { %20 = vsyncpa [#allocation5], 0  ;;  %vm87_vm0 = vcmask 1043456   ;;  %vm62_vm1 = vcmask 31744   ;;  %v4265_v6 = vmov 0.0   ;;  %s5008_s0 = inlined_call_operand.vmem [shape: f32[64,4], index: 0, kind: input, shape index: {}]   ;;  %s5009_s1 = inlined_call_operand.vmem [shape: f32[2,8,8], index: 1, kind: input, shape index: {}]   ;;  %s5010_s2 = inlined_call_operand.vmem [shape: f32[2,8,32], index: 2, kind: input, shape index: {}]   ;;  %s5011_s3 = inlined_call_operand.vmem [shape: f32[4,128], index: 3, kind: input, shape index: {}]   ;;  %s5012_s4 = inlined_call_operand.vmem [shape: f32[8,128], index: 4, kind: input, shape index: {}]   ;;  %s5013_s5 = inlined_call_operand.vmem [shape: f32[1,128], index: 5, kind: input, shape index: {}]   ;;  %s5014_s6 = inlined_call_operand.vmem [shape: f32[32,8], index: 6, kind: input, shape index: {}]   ;;  %s5015_s7 = inlined_call_operand.vmem [shape: f32[16,128], index: 7, kind: input, shape index: {}]   ;;  %s5016_s8 = inlined_call_operand.vmem [shape: f32[1,128], index: 8, kind: input, shape index: {}]   ;;  %s5017_s9 = inlined_call_operand.vmem [shape: f32[32,8], index: 9, kind: input, shape index: {}]   ;;  %s5018_s10 = inlined_call_operand.vmem [shape: f32[8,128], index: 10, kind: input, shape index: {}]   ;;  %s5019_s11 = inlined_call_operand.vmem [shape: f32[1,128], index: 11, kind: input, shape index: {}]   ;;  %s5020_s12 = inlined_call_operand.hbm [shape: f32[64,128], index: 12, kind: output, shape index: {0}]   ;;  %s5021_s13 = inlined_call_operand.hbm [shape: f32[2,8,8], index: 13, kind: output, shape index: {1}]   ;;  %s5022_s14 = inlined_call_operand.hbm [shape: f32[2,8,32], index: 14, kind: output, shape index: {2}]  }
   0x1   :  { %v54_v0 = vld [vmem:[%s5011_s3] sm:$0xf]  ;;  %v51_v2 = vld [vmem:[%s5008_s0 + $0x28] sm:$0xff]  ;;  %v52_v4 = vld [vmem:[%s5008_s0 + $0x30] sm:$0xff] }
   0x2   :  { %v50_v1 = vld [vmem:[%s5008_s0 + $0x20] sm:$0xff]  ;;  %4017 = vmatprep.subr.msk.mxu1 %vm87_vm0, %v54_v0  ;;  %3597 = vmatprep.subr.msk.mxu0 %vm87_vm0, %v54_v0  ;;  %v47_v7 = vld [vmem:[%s5008_s0 + $0x8] sm:$0xff] }
   0x3   :  { %3605 = vmatprep.mubr.msk.f32.mxu1 %vm62_vm1, %v50_v1  ;;  %v4365_v3 = vld [vmem:[%s5012_s4] sm:$0xff]  ;;  %4018 = vmatpush3.msk.msra.mxu1 %vm87_vm0, %v54_v0 }
   0x4   :  { %v46_v5 = vld [vmem:[%s5008_s0] sm:$0xff]  ;;  %3606 = vmatmul.mubr.msk.f32.vlgmr.msra.gmra.mrb[0].mxu1 %vm62_vm1, %v51_v2  ;;  %3611 = vmatprep.subr.mxu1 %v4265_v6 }
   0x5   :  { %21 = vsyncpa [#allocation7], 0  ;;  %3612 = vmatpush3.msra.mxu1 %v4365_v3  ;;  %3608 = vmatprep.mubr.msk.f32.mxu1 %vm62_vm1, %v52_v4  ;;  %v53_v8 = vld [vmem:[%s5008_s0 + $0x38] sm:$0xff]  ;;  %vm4266_vm2 = vmmov 0   ;;  %v216_v9 = vld [vmem:[%s5009_s1] sm:$0xff]  ;;  %vm223_vm3 = vcmask 64512  }
   0x6   :  { %3598 = vmatpush3.msk.msra.mxu0 %vm87_vm0, %v54_v0  ;;  %3599 = vmatprep.mubr.msk.f32.mxu0 %vm62_vm1, %v46_v5  ;;  %v4406_v13 = vld [vmem:[%s5013_s5] ss:$0 sm:$0xff]  ;;  %s4267_s16 = smov 32   ;;  %v206_v34 = vld [vmem:[%s5014_s6 + $0x8] sm:$0xff]  ;;  %v207_v35 = vld [vmem:[%s5014_s6 + $0x10] sm:$0xff]  ;;  %v4268_v36 = vmov 0.0|0.0  }
   0x7   :  { %3600 = vmatmul.mubr.msk.f32.vlgmr.msra.gmra.mrb[0].mxu0 %vm62_vm1, %v47_v7  ;;  %v219_v22 = vld [vmem:[%s5010_s2] sm:$0xff]  ;;  %3897 = vmatprep.subr.bf16.mxu1 %v4268_v36  ;;  %v208_v38 = vld [vmem:[%s5014_s6 + $0x18] sm:$0xff]  ;;  %v3399_v41 = vld [vmem:[%s5009_s1 + $0x8] sm:$0xff]  ;;  %s4270_s28 = smov 64   ;;  %vm329_vm4 = vcmask 261120   ;;  %vm413_vm5 = vcmask 130048  }
   0x8   :  { %3609 = vmatmul.mubr.msk.f32.gmra.mrb[2].mxu1 %vm62_vm1, %v53_v8  ;;  %v205_v33 = vld [vmem:[%s5014_s6] sm:$0xff]  ;;  %3906 = vmatprep.subr.bf16.mxu0 %v4268_v36  ;;  %v4439_v39 = vpack.c.bf16 %v208_v38, %v207_v35  ;;  %s4269_s6 = smov 8   ;;  %v210_v45 = vld [vmem:[%s5015_s7 + $0x8] sm:$0xff]  ;;  %vm3244_vm6 = vcmask 39936  }
   0x9   :  { %3613 = vmatprep.mubr.msk.f32.mxu1 %vm4266_vm2, %v4265_v6  ;;  %v4432_v37 = vpack.c.bf16 %v206_v34, %v205_v33  ;;  %v209_v44 = vld [vmem:[%s5015_s7] sm:$0xff]  ;;  %v3400_v48 = vld [vmem:[%s5010_s2 + $0x8] sm:$0xff] }
   0xa   :  { %v4456_v46 = vpack.c.bf16 %v210_v45, %v209_v44  ;;  %v4481_v53 = vld [vmem:[%s5016_s8] ss:$0 sm:$0xff] }
   0xc   :  { %3614 = vmatmul.mubr.msk.f32.vlgmr.msra.gmra.mrb[4].mxu1 %vm223_vm3, %v216_v9 }
   0xd   :  { %3624 = vmatprep.mubr.msk.f32.mxu1 %vm4266_vm2, %v4265_v6  ;;  %3899 = vmatpush3.bf16.msra.mxu1 %v4432_v37 }
   0xe   :  { %3900 = vmatprep.subr.bf16.mxu1 %v4268_v36 }
  0x11   :  { %3902 = vmatpush3.bf16.msra.mxu1 %v4439_v39 }
  0x12   :  { %3903 = vmatprep.subr.bf16.mxu1 %v4268_v36 }
  0xd7   :  { %v4397_v10 = vpop.f32.mrb[0].mxu1 }
  0xd8   :  { %v4399_v11 = vpop.f32.mrb[1].mxu1 }
  0xda   :  { %v4401_v12 = vpop.f32.mrb[0].mxu0 }
  0xdb   :  { %v4408_v14 = vpop.f32.mrb[2].mxu1  ;;  %v157_v15 = vpop.f32.mrb[1].mxu0  ;;  %v163_v57 = vadd.f32 %v4401_v12, %v4406_v13 }
  0xdc   :  { %v4410_v16 = vpop.f32.mrb[3].mxu1  ;;  %v158_v17 = vadd.f32 %v4406_v13, %v157_v15 }
  0xdf   :  { %v293_v18 = vpop.f32.mrb[4].mxu1 }
  0xe0   :  { %v297_v19 = vadd.f32 %v293_v18, %v158_v17  ;;  %v3615_v20 = vpop.f32.mrb[5].mxu1 }
  0xe2   :  { %4030 = vtanh.f32 %v297_v19  ;;  %v3402_v23 = vmul.f32 -1.442695, %v297_v19 }
  0xe4   :  { %4032 = vpow2.f32 %v3402_v23 }
  0xec   :  { %v4031_v21 = vpop.eup %4030 }
  0xed   :  { %311 = vrot.lane.b32.xlu0 %v4031_v21, %s4267_s16 }
  0xee   :  { %v4033_v24 = vpop.eup %4032 }
  0xef   :  { %v301_v25 = vadd.f32 1.0, %v4033_v24 }
  0xf1   :  { %306 = vrot.lane.b32.xlu0 %v219_v22, %s4267_s16  ;;  %4034 = vrcp.f32 %v301_v25  ;;  %v212_v25 = vld [vmem:[%s5017_s9] sm:$0xff] }
  0xfb   :  { %v4035_v26 = vpop.eup %4034 }
 0x15f   :  { %v312_v27 = vpop.permute.xlu0 %311 }
 0x160   :  { %v314_v28 = vmul.f32 %v4035_v26, %v312_v27  ;;  %v48_v27 = vld [vmem:[%s5008_s0 + $0x10] sm:$0xff] }
 0x161   :  { %3602 = vmatprep.mubr.msk.f32.mxu0 %vm62_vm1, %v48_v27 }
 0x162   :  { %316 = vrot.lane.b32.xlu1 %v314_v28, %s4267_s16 }
 0x163   :  { %v307_v29 = vpop.permute.xlu0 %306 }
 0x164   :  { %v309_v30 = vmul.f32 %v4035_v26, %v307_v29  ;;  %v49_v29 = vld [vmem:[%s5008_s0 + $0x18] sm:$0xff] }
 0x165   :  { %3603 = vmatmul.mubr.msk.f32.gmra.mrb[2].mxu0 %vm62_vm1, %v49_v29 }
 0x166   :  { %3642 = vmatprep.mubr.msk.f32.mxu0 %vm4266_vm2, %v4265_v6 }
 0x1d4   :  { %v317_v31 = vpop.permute.xlu1 %316 }
 0x1d5   :  { %v4419_v32 = vadd.f32 %v317_v31, %v309_v30  ;;  %v214_v30 = vld [vmem:[%s5017_s9 + $0x10] sm:$0xff]  ;;  %v215_v31 = vld [vmem:[%s5017_s9 + $0x18] sm:$0xff] }
 0x1d7   :  { %4036 = vtanh.f32 %v4419_v32 }
 0x1e1   :  { %v4037_v40 = vpop.eup %4036 }
 0x1e2   :  { %322 = vrot.lane.b32.xlu1 %v4037_v40, %s4267_s16 }
 0x1e6   :  { %403 = vrot.lane.b32.xlu1 %v3399_v41, %s4269_s6 }
 0x1ea   :  { %495 = vrot.lane.b32.xlu1 %v3400_v48, %s4267_s16 }
 0x254   :  { %v323_v42 = vpop.permute.xlu1 %322 }
 0x255   :  { %v325_v43 = vmul.f32 %v4035_v26, %v323_v42  ;;  %v213_v26 = vld [vmem:[%s5017_s9 + $0x8] sm:$0xff]  ;;  %v4531_v42 = vpop.f32.mrb[2].mxu0 }
 0x256   :  { %v4506_v28 = vpack.c.bf16 %v213_v26, %v212_v25 }
 0x257   :  { %327 = vrot.lane.b32.xlu0 %v325_v43, %s4270_s28  ;;  %v167_v43 = vpop.f32.mrb[3].mxu0 }
 0x258   :  { %v404_v49 = vpop.permute.xlu1 %403  ;;  %3908 = vmatpush3.bf16.msra.mxu0 %v4506_v28 }
 0x259   :  { %3909 = vmatprep.subr.bf16.mxu0 %v4268_v36 }
 0x25c   :  { %v496_v18 = vpop.permute.xlu1 %495 }
 0x2c9   :  { %v328_v47 = vpop.permute.xlu0 %327 }
 0x2ca   :  { %3625 = vmatmul.mubr.msk.f32.vlgmr.msra.gmra.mrb[6].mxu1 %vm329_vm4, %v328_v47 }
 0x2cb   :  { %3905 = vmatpush3.bf16.msra.mxu1 %v4456_v46  ;;  %3631 = vmatprep.mubr.msk.f32.mxu1 %vm4266_vm2, %v4265_v6 }
 0x2cc   :  { %3645 = vmatprep.subr.mxu1 %v4265_v6 }
 0x39d   :  { %v398_v50 = vpop.f32.mrb[6].mxu1 }
 0x39e   :  { %v406_v51 = vsel %vm223_vm3, %v398_v50, %v404_v49  ;;  %v3626_v52 = vpop.f32.mrb[7].mxu1 }
 0x39f   :  { %3632 = vmatmul.mubr.msk.f32.vlgmr.msra.gmra.mrb[8].mxu1 %vm413_vm5, %v406_v51 }
 0x3a0   :  { %3646 = vmatpush3.msra.mxu1 %v4365_v3  ;;  %3647 = vmatprep.mubr.msk.f32.mxu1 %vm4266_vm2, %v4265_v6 }
 0x3a1   :  { %3918 = vmatprep.subr.bf16.mxu1 %v4268_v36 }
 0x3a3   :  { %3648 = vmatmul.mubr.msk.f32.vlgmr.msra.gmra.mrb[10].mxu1 %vm223_vm3, %v398_v50 }
 0x3a4   :  { %3920 = vmatpush3.bf16.msra.mxu1 %v4456_v46  ;;  %3665 = vmatprep.mubr.msk.f32.mxu1 %vm4266_vm2, %v4265_v6 }
 0x3a5   :  { %3921 = vmatprep.subr.bf16.mxu1 %v4268_v36 }
 0x472   :  { %v483_v54 = vpop.f32.mrb[8].mxu1 }
 0x473   :  { %v484_v55 = vadd.f32 %v4481_v53, %v483_v54  ;;  %v3633_v56 = vpop.f32.mrb[9].mxu1  ;;  %v168_v54 = vadd.f32 %v4406_v13, %v167_v43 }
 0x475   :  { %4038 = vtanh.f32 %v484_v55  ;;  %v3406_v63 = vmul.f32 -1.442695, %v484_v55 }
 0x476   :  { %v662_v58 = vpop.f32.mrb[10].mxu1 }
 0x477   :  { %v666_v59 = vadd.f32 %v662_v58, %v163_v57  ;;  %v3649_v60 = vpop.f32.mrb[11].mxu1 }
 0x479   :  { %4040 = vtanh.f32 %v666_v59  ;;  %v3409_v0 = vmul.f32 -1.442695, %v666_v59 }
 0x47a   :  { %4042 = vpow2.f32 %v3406_v63 }
 0x47b   :  { %4044 = vpow2.f32 %v3409_v0 }
 0x47f   :  { %v4039_v61 = vpop.eup %4038 }
 0x480   :  { %500 = vrot.lane.b32.xlu0 %v4039_v61, %s4267_s16 }
 0x483   :  { %v4041_v62 = vpop.eup %4040 }
 0x484   :  { %676 = vrot.lane.b32.xlu0 %v4041_v62, %s4267_s16  ;;  %v4043_v1 = vpop.eup %4042 }
 0x485   :  { %v490_v2 = vadd.f32 1.0, %v4043_v1  ;;  %v4045_v4 = vpop.eup %4044 }
 0x486   :  { %v670_v5 = vadd.f32 1.0, %v4045_v4 }
 0x487   :  { %4046 = vrcp.f32 %v490_v2 }
 0x488   :  { %4048 = vrcp.f32 %v670_v5 }
 0x491   :  { %v4047_v7 = vpop.eup %4046 }
 0x492   :  { %v4049_v12 = vpop.eup %4048  ;;  %v498_v19 = vmul.f32 %v4047_v7, %v496_v18 }
 0x493   :  { %v674_v22 = vmul.f32 %v4049_v12, %v4419_v32  ;;  %v4520_v32 = vpack.c.bf16 %v215_v31, %v214_v30 }
 0x495   :  { %3911 = vmatpush3.bf16.msra.mxu0 %v4520_v32 }
 0x496   :  { %3912 = vmatprep.subr.bf16.mxu0 %v4268_v36 }
 0x4f2   :  { %v501_v8 = vpop.permute.xlu0 %500 }
 0x4f3   :  { %v503_v9 = vmul.f32 %v4047_v7, %v501_v8 }
 0x4f5   :  { %505 = vrot.lane.b32.xlu1 %v503_v9, %s4267_s16 }
 0x4f6   :  { %v677_v15 = vpop.permute.xlu0 %676 }
 0x4f7   :  { %v679_v17 = vmul.f32 %v4049_v12, %v677_v15 }
 0x4f9   :  { %681 = vrot.lane.b32.xlu0 %v679_v17, %s4267_s16 }
 0x567   :  { %v506_v20 = vpop.permute.xlu1 %505 }
 0x568   :  { %v4490_v21 = vadd.f32 %v506_v20, %v498_v19 }
 0x56a   :  { %4050 = vtanh.f32 %v4490_v21 }
 0x56b   :  { %v682_v23 = vpop.permute.xlu0 %681 }
 0x56c   :  { %v4494_v24 = vadd.f32 %v682_v23, %v674_v22 }
 0x56e   :  { %4052 = vtanh.f32 %v4494_v24 }
 0x574   :  { %v4051_v33 = vpop.eup %4050 }
 0x575   :  { %511 = vrot.lane.b32.xlu1 %v4051_v33, %s4267_s16 }
 0x578   :  { %v4053_v34 = vpop.eup %4052 }
 0x579   :  { %687 = vrot.lane.b32.xlu0 %v4053_v34, %s4267_s16 }
 0x5e7   :  { %v512_v35 = vpop.permute.xlu1 %511 }
 0x5e8   :  { %v514_v38 = vmul.f32 %v4047_v7, %v512_v35 }
 0x5ea   :  { %516 = vrot.lane.b32.xlu1 %v514_v38, %s4270_s28 }
 0x5eb   :  { %v688_v40 = vpop.permute.xlu0 %687 }
 0x5ec   :  { %v690_v41 = vmul.f32 %v4049_v12, %v688_v40 }
 0x5ee   :  { %692 = vrot.lane.b32.xlu0 %v690_v41, %s4270_s28  ;;  %v173_v41 = vadd.f32 %v4531_v42, %v4406_v13 }
 0x65c   :  { %v517_v44 = vpop.permute.xlu1 %516 }
 0x65d   :  { %3643 = vmatmul.mubr.msk.f32.vlgmr.msra.gmra.mrb[4].mxu0 %vm329_vm4, %v517_v44 }
 0x65e   :  { %3914 = vmatpush3.bf16.msra.mxu0 %v4432_v37  ;;  %3658 = vmatprep.mubr.msk.f32.mxu0 %vm4266_vm2, %v4265_v6 }
 0x65f   :  { %3915 = vmatprep.subr.bf16.mxu0 %v4268_v36 }
 0x660   :  { %v693_v45 = vpop.permute.xlu0 %692 }
 0x662   :  { %3917 = vmatpush3.bf16.msra.mxu0 %v4439_v39 }
 0x663   :  { %3679 = vmatprep.subr.mxu0 %v4265_v6 }
 0x665   :  { %3659 = vmatmul.mubr.msk.f32.vlgmr.msra.gmra.mrb[6].mxu0 %vm329_vm4, %v693_v45 }
 0x666   :  { %3680 = vmatpush3.msra.mxu0 %v4365_v3  ;;  %3681 = vmatprep.mubr.msk.f32.mxu0 %vm4266_vm2, %v4265_v6 }
 0x667   :  { %3927 = vmatprep.subr.bf16.mxu0 %v4268_v36 }
 0x730   :  { %v586_v47 = vpop.f32.mrb[4].mxu0 }
 0x731   :  { %590 = vst.msk [vmem:[#allocation3] sm:$0xff] %vm223_vm3, %v586_v47  ;;  %767 = vrot.lane.b32.xlu1 %v586_v47, %s4269_s6  ;;  %v3644_v48 = vpop.f32.mrb[5].mxu0 }
 0x738   :  { %v762_v49 = vpop.f32.mrb[6].mxu0 }
 0x739   :  { %v3660_v50 = vpop.f32.mrb[7].mxu0  ;;  %3682 = vmatmul.mubr.msk.f32.vlgmr.msra.gmra.mrb[8].mxu0 %vm223_vm3, %v762_v49 }
 0x73a   :  { %3929 = vmatpush3.bf16.msra.mxu0 %v4432_v37  ;;  %3692 = vmatprep.mubr.msk.f32.mxu0 %vm4266_vm2, %v4265_v6 }
 0x73b   :  { %3930 = vmatprep.subr.bf16.mxu0 %v4268_v36 }
 0x73e   :  { %3932 = vmatpush3.bf16.msra.mxu0 %v4439_v39 }
 0x73f   :  { %3713 = vmatprep.subr.mxu0 %v4265_v6 }
 0x7a3   :  { %v768_v51 = vpop.permute.xlu1 %767 }
 0x7a4   :  { %v770_v52 = vsel %vm223_vm3, %v762_v49, %v768_v51 }
 0x7a5   :  { %3666 = vmatmul.mubr.msk.f32.vlgmr.msra.gmra.mrb[12].mxu1 %vm413_vm5, %v770_v52 }
 0x7a6   :  { %3923 = vmatpush3.bf16.msra.mxu1 %v4506_v28  ;;  %3676 = vmatprep.mubr.msk.f32.mxu1 %vm4266_vm2, %v4265_v6 }
 0x7a7   :  { %3924 = vmatprep.subr.bf16.mxu1 %v4268_v36 }
 0x7aa   :  { %3926 = vmatpush3.bf16.msra.mxu1 %v4520_v32 }
 0x7ab   :  { %3933 = vmatprep.subr.bf16.mxu1 %v4268_v36 }
 0x80c   :  { %v1016_v55 = vpop.f32.mrb[8].mxu0 }
 0x80d   :  { %v1020_v56 = vadd.f32 %v1016_v55, %v168_v54  ;;  %v3683_v57 = vpop.f32.mrb[9].mxu0 }
 0x80f   :  { %4054 = vtanh.f32 %v1020_v56  ;;  %v3415_v59 = vmul.f32 -1.442695, %v1020_v56 }
 0x811   :  { %4056 = vpow2.f32 %v3415_v59 }
 0x819   :  { %v4055_v58 = vpop.eup %4054 }
 0x81a   :  { %1030 = vrot.lane.b32.xlu1 %v4055_v58, %s4267_s16 }
 0x81b   :  { %v4057_v63 = vpop.eup %4056 }
 0x81c   :  { %v1024_v0 = vadd.f32 1.0, %v4057_v63 }
 0x878   :  { %v840_v60 = vpop.f32.mrb[12].mxu1 }
 0x879   :  { %v841_v61 = vadd.f32 %v4481_v53, %v840_v60  ;;  %v3667_v62 = vpop.f32.mrb[13].mxu1 }
 0x87b   :  { %4058 = vtanh.f32 %v841_v61  ;;  %v3412_v7 = vmul.f32 -1.442695, %v841_v61 }
 0x87c   :  { %4060 = vrcp.f32 %v1024_v0 }
 0x87d   :  { %4062 = vpow2.f32 %v3412_v7 }
 0x885   :  { %v4059_v1 = vpop.eup %4058 }
 0x886   :  { %853 = vrot.lane.b32.xlu0 %v4059_v1, %s4267_s16  ;;  %v4061_v2 = vpop.eup %4060 }
 0x887   :  { %v4063_v8 = vpop.eup %4062  ;;  %v1028_v18 = vmul.f32 %v4061_v2, %v4494_v24 }
 0x888   :  { %v847_v9 = vadd.f32 1.0, %v4063_v8 }
 0x88a   :  { %4064 = vrcp.f32 %v847_v9 }
 0x88c   :  { %v1031_v4 = vpop.permute.xlu1 %1030 }
 0x88d   :  { %v1033_v5 = vmul.f32 %v4061_v2, %v1031_v4 }
 0x88f   :  { %1035 = vrot.lane.b32.xlu1 %v1033_v5, %s4267_s16 }
 0x894   :  { %v4065_v12 = vpop.eup %4064 }
 0x895   :  { %v851_v23 = vmul.f32 %v4065_v12, %v4490_v21 }
 0x8f8   :  { %v854_v15 = vpop.permute.xlu0 %853 }
 0x8f9   :  { %v856_v17 = vmul.f32 %v4065_v12, %v854_v15 }
 0x8fb   :  { %858 = vrot.lane.b32.xlu0 %v856_v17, %s4267_s16 }
 0x901   :  { %v1036_v19 = vpop.permute.xlu1 %1035 }
 0x902   :  { %v4569_v20 = vadd.f32 %v1036_v19, %v1028_v18 }
 0x904   :  { %4066 = vtanh.f32 %v4569_v20 }
 0x90e   :  { %v4067_v22 = vpop.eup %4066 }
 0x90f   :  { %1041 = vrot.lane.b32.xlu1 %v4067_v22, %s4267_s16 }
 0x96d   :  { %v859_v25 = vpop.permute.xlu0 %858 }
 0x96e   :  { %v4574_v26 = vadd.f32 %v859_v25, %v851_v23 }
 0x970   :  { %4068 = vtanh.f32 %v4574_v26 }
 0x97a   :  { %v4069_v27 = vpop.eup %4068 }
 0x97b   :  { %864 = vrot.lane.b32.xlu0 %v4069_v27, %s4267_s16  ;;  %v178_v27 = vadd.f32 %v4406_v13, %v4399_v11 }
 0x981   :  { %v1042_v29 = vpop.permute.xlu1 %1041 }
 0x982   :  { %v1044_v24 = vmul.f32 %v4061_v2, %v1042_v29 }
 0x984   :  { %1046 = vrot.lane.b32.xlu1 %v1044_v24, %s4270_s28 }
 0x9ed   :  { %v865_v30 = vpop.permute.xlu0 %864 }
 0x9ee   :  { %v867_v31 = vmul.f32 %v4065_v12, %v865_v30 }
 0x9f0   :  { %869 = vrot.lane.b32.xlu0 %v867_v31, %s4270_s28 }
 0x9f6   :  { %v1047_v33 = vpop.permute.xlu1 %1046 }
 0x9f7   :  { %3693 = vmatmul.mubr.msk.f32.vlgmr.msra.gmra.mrb[10].mxu0 %vm329_vm4, %v1047_v33 }
 0x9f8   :  { %3714 = vmatpush3.msra.mxu0 %v4365_v3  ;;  %3715 = vmatprep.mubr.msk.f32.mxu0 %vm4266_vm2, %v4265_v6 }
 0x9f9   :  { %3942 = vmatprep.subr.bf16.mxu0 %v4268_v36 }
 0xa62   :  { %v870_v21 = vpop.permute.xlu0 %869 }
 0xa63   :  { %3677 = vmatmul.mubr.msk.f32.vlgmr.msra.gmra.mrb[14].mxu1 %vm329_vm4, %v870_v21 }
 0xa64   :  { %3935 = vmatpush3.bf16.msra.mxu1 %v4456_v46  ;;  %3699 = vmatprep.mubr.msk.f32.mxu1 %vm4266_vm2, %v4265_v6 }
 0xa65   :  { %3936 = vmatprep.subr.bf16.mxu1 %v4268_v36 }
 0xaca   :  { %v1116_v34 = vpop.f32.mrb[10].mxu0 }
 0xacb   :  { %v3694_v35 = vpop.f32.mrb[11].mxu0  ;;  %3716 = vmatmul.mubr.msk.f32.vlgmr.msra.gmra.mrb[12].mxu0 %vm223_vm3, %v1116_v34 }
 0xacc   :  { %3944 = vmatpush3.bf16.msra.mxu0 %v4432_v37  ;;  %3726 = vmatprep.mubr.msk.f32.mxu0 %vm4266_vm2, %v4265_v6 }
 0xacd   :  { %3945 = vmatprep.subr.bf16.mxu0 %v4268_v36 }
 0xad0   :  { %3947 = vmatpush3.bf16.msra.mxu0 %v4439_v39 }
 0xad1   :  { %3747 = vmatprep.subr.mxu0 %v4265_v6 }
 0xb36   :  { %v939_v38 = vpop.f32.mrb[14].mxu1 }
 0xb37   :  { %944 = vst.msk [vmem:[#allocation3 + $0x8] sm:$0xff] %vm223_vm3, %v939_v38  ;;  %1121 = vrot.lane.b32.xlu0 %v939_v38, %s4269_s6  ;;  %v3678_v40 = vpop.f32.mrb[15].mxu1 }
 0xb9e   :  { %v1370_v43 = vpop.f32.mrb[12].mxu0 }
 0xb9f   :  { %v1374_v44 = vadd.f32 %v1370_v43, %v173_v41  ;;  %v3717_v45 = vpop.f32.mrb[13].mxu0 }
 0xba1   :  { %4070 = vtanh.f32 %v1374_v44  ;;  %v3421_v42 = vmul.f32 -1.442695, %v1374_v44 }
 0xba3   :  { %4072 = vpow2.f32 %v3421_v42 }
 0xba9   :  { %v1122_v47 = vpop.permute.xlu0 %1121 }
 0xbaa   :  { %v1124_v48 = vsel %vm223_vm3, %v1116_v34, %v1122_v47 }
 0xbab   :  { %v4071_v49 = vpop.eup %4070  ;;  %3700 = vmatmul.mubr.msk.f32.vlgmr.msra.gmra.mrb[16].mxu1 %vm413_vm5, %v1124_v48 }
 0xbac   :  { %1384 = vrot.lane.b32.xlu0 %v4071_v49, %s4267_s16  ;;  %3938 = vmatpush3.bf16.msra.mxu1 %v4506_v28 }
 0xbad   :  { %3939 = vmatprep.subr.bf16.mxu1 %v4268_v36  ;;  %3710 = vmatprep.mubr.msk.f32.mxu1 %vm4266_vm2, %v4265_v6  ;;  %v4073_v50 = vpop.eup %4072 }
 0xbae   :  { %v1378_v51 = vadd.f32 1.0, %v4073_v50 }
 0xbb0   :  { %3941 = vmatpush3.bf16.msra.mxu1 %v4520_v32  ;;  %4074 = vrcp.f32 %v1378_v51 }
 0xbb1   :  { %3948 = vmatprep.subr.bf16.mxu1 %v4268_v36 }
 0xbba   :  { %v4075_v52 = vpop.eup %4074 }
 0xbbb   :  { %v1382_v60 = vmul.f32 %v4075_v52, %v4569_v20 }
 0xc1e   :  { %v1385_v54 = vpop.permute.xlu0 %1384 }
 0xc1f   :  { %v1387_v55 = vmul.f32 %v4075_v52, %v1385_v54 }
 0xc21   :  { %1389 = vrot.lane.b32.xlu0 %v1387_v55, %s4267_s16 }
 0xc7e   :  { %v1194_v56 = vpop.f32.mrb[16].mxu1 }
 0xc7f   :  { %v1195_v57 = vadd.f32 %v4481_v53, %v1194_v56  ;;  %v3701_v58 = vpop.f32.mrb[17].mxu1 }
 0xc81   :  { %4076 = vtanh.f32 %v1195_v57  ;;  %v3418_v0 = vmul.f32 -1.442695, %v1195_v57 }
 0xc8b   :  { %v4077_v59 = vpop.eup %4076 }
 0xc8c   :  { %1207 = vrot.lane.b32.xlu1 %v4077_v59, %s4267_s16 }
 0xc93   :  { %v1390_v61 = vpop.permute.xlu0 %1389 }
 0xc94   :  { %v4614_v62 = vadd.f32 %v1390_v61, %v1382_v60 }
 0xc96   :  { %4078 = vtanh.f32 %v4614_v62 }
 0xc97   :  { %4080 = vpow2.f32 %v3418_v0 }
 0xca0   :  { %v4079_v63 = vpop.eup %4078 }
 0xca1   :  { %1395 = vrot.lane.b32.xlu0 %v4079_v63, %s4267_s16  ;;  %v4081_v1 = vpop.eup %4080 }
 0xca2   :  { %v1201_v2 = vadd.f32 1.0, %v4081_v1 }
 0xca4   :  { %4082 = vrcp.f32 %v1201_v2 }
 0xcae   :  { %v4083_v4 = vpop.eup %4082 }
 0xcaf   :  { %v1205_v12 = vmul.f32 %v4083_v4, %v4574_v26 }
 0xcfe   :  { %v1208_v5 = vpop.permute.xlu1 %1207 }
 0xcff   :  { %v1210_v7 = vmul.f32 %v4083_v4, %v1208_v5 }
 0xd01   :  { %1212 = vrot.lane.b32.xlu1 %v1210_v7, %s4267_s16 }
 0xd13   :  { %v1396_v8 = vpop.permute.xlu0 %1395 }
 0xd14   :  { %v1398_v9 = vmul.f32 %v4075_v52, %v1396_v8 }
 0xd16   :  { %1400 = vrot.lane.b32.xlu0 %v1398_v9, %s4270_s28 }
 0xd73   :  { %v1213_v15 = vpop.permute.xlu1 %1212 }
 0xd74   :  { %v4621_v17 = vadd.f32 %v1213_v15, %v1205_v12  ;;  %v183_v12 = vadd.f32 %v4397_v10, %v4406_v13 }
 0xd76   :  { %4084 = vtanh.f32 %v4621_v17 }
 0xd80   :  { %v4085_v18 = vpop.eup %4084 }
 0xd81   :  { %1218 = vrot.lane.b32.xlu1 %v4085_v18, %s4267_s16 }
 0xd88   :  { %v1401_v19 = vpop.permute.xlu0 %1400 }
 0xd89   :  { %3727 = vmatmul.mubr.msk.f32.vlgmr.msra.gmra.mrb[14].mxu0 %vm329_vm4, %v1401_v19 }
 0xd8a   :  { %3748 = vmatpush3.msra.mxu0 %v4365_v3  ;;  %3749 = vmatprep.mubr.msk.f32.mxu0 %vm4266_vm2, %v4265_v6 }
 0xd8b   :  { %3957 = vmatprep.subr.bf16.mxu0 %v4268_v36 }
 0xdf3   :  { %v1219_v20 = vpop.permute.xlu1 %1218 }
 0xdf4   :  { %v1221_v22 = vmul.f32 %v4083_v4, %v1219_v20 }
 0xdf6   :  { %1223 = vrot.lane.b32.xlu1 %v1221_v22, %s4270_s28 }
 0xe5c   :  { %v1470_v23 = vpop.f32.mrb[14].mxu0 }
 0xe5d   :  { %v3728_v25 = vpop.f32.mrb[15].mxu0  ;;  %3750 = vmatmul.mubr.msk.f32.vlgmr.msra.gmra.mrb[16].mxu0 %vm223_vm3, %v1470_v23 }
 0xe5e   :  { %3959 = vmatpush3.bf16.msra.mxu0 %v4432_v37  ;;  %3760 = vmatprep.mubr.msk.f32.mxu0 %vm4266_vm2, %v4265_v6 }
 0xe5f   :  { %3960 = vmatprep.subr.bf16.mxu0 %v4268_v36 }
 0xe62   :  { %3962 = vmatpush3.bf16.msra.mxu0 %v4439_v39 }
 0xe63   :  { %3781 = vmatprep.subr.mxu0 %v4265_v6 }
 0xe68   :  { %v1224_v26 = vpop.permute.xlu1 %1223 }
 0xe69   :  { %3711 = vmatmul.mubr.msk.f32.vlgmr.msra.gmra.mrb[18].mxu1 %vm329_vm4, %v1224_v26 }
 0xe6a   :  { %3950 = vmatpush3.bf16.msra.mxu1 %v4456_v46  ;;  %3733 = vmatprep.mubr.msk.f32.mxu1 %vm4266_vm2, %v4265_v6 }
 0xe6b   :  { %3951 = vmatprep.subr.bf16.mxu1 %v4268_v36 }
 0xf30   :  { %v1724_v29 = vpop.f32.mrb[16].mxu0 }
 0xf31   :  { %v1728_v24 = vadd.f32 %v1724_v29, %v178_v27  ;;  %v3751_v30 = vpop.f32.mrb[17].mxu0 }
 0xf33   :  { %4086 = vtanh.f32 %v1728_v24  ;;  %v3427_v34 = vmul.f32 -1.442695, %v1728_v24 }
 0xf35   :  { %4088 = vpow2.f32 %v3427_v34 }
 0xf3c   :  { %v1293_v31 = vpop.f32.mrb[18].mxu1 }
 0xf3d   :  { %1298 = vst.msk [vmem:[#allocation3 + $0x10] sm:$0xff] %vm223_vm3, %v1293_v31  ;;  %1475 = vrot.lane.b32.xlu1 %v1293_v31, %s4269_s6  ;;  %v3712_v33 = vpop.f32.mrb[19].mxu1  ;;  %v4087_v21 = vpop.eup %4086 }
 0xf3f   :  { %v4089_v35 = vpop.eup %4088 }
 0xf40   :  { %v1732_v38 = vadd.f32 1.0, %v4089_v35 }
 0xf41   :  { %1738 = vrot.lane.b32.xlu1 %v4087_v21, %s4267_s16 }
 0xf42   :  { %4090 = vrcp.f32 %v1732_v38 }
 0xf4c   :  { %v4091_v41 = vpop.eup %4090 }
 0xf4d   :  { %v1736_v45 = vmul.f32 %v4091_v41, %v4614_v62 }
 0xfaf   :  { %v1476_v40 = vpop.permute.xlu1 %1475 }
 0xfb0   :  { %v1478_v11 = vsel %vm223_vm3, %v1470_v23, %v1476_v40 }
 0xfb1   :  { %3734 = vmatmul.mubr.msk.f32.vlgmr.msra.gmra.mrb[20].mxu1 %vm413_vm5, %v1478_v11 }
 0xfb2   :  { %3953 = vmatpush3.bf16.msra.mxu1 %v4506_v28  ;;  %3744 = vmatprep.mubr.msk.f32.mxu1 %vm4266_vm2, %v4265_v6 }
 0xfb3   :  { %v1739_v43 = vpop.permute.xlu1 %1738  ;;  %3954 = vmatprep.subr.bf16.mxu1 %v4268_v36 }
 0xfb4   :  { %v1741_v44 = vmul.f32 %v4091_v41, %v1739_v43 }
 0xfb6   :  { %1743 = vrot.lane.b32.xlu1 %v1741_v44, %s4267_s16  ;;  %3956 = vmatpush3.bf16.msra.mxu1 %v4520_v32 }
 0xfb7   :  { %3963 = vmatprep.subr.bf16.mxu1 %v4268_v36 }
0x1028   :  { %v1744_v47 = vpop.permute.xlu1 %1743 }
0x1029   :  { %v4658_v48 = vadd.f32 %v1744_v47, %v1736_v45 }
0x102b   :  { %4092 = vtanh.f32 %v4658_v48 }
0x1035   :  { %v4093_v49 = vpop.eup %4092 }
0x1036   :  { %1749 = vrot.lane.b32.xlu1 %v4093_v49, %s4267_s16 }
0x1084   :  { %v1548_v42 = vpop.f32.mrb[20].mxu1 }
0x1085   :  { %v1549_v50 = vadd.f32 %v4481_v53, %v1548_v42  ;;  %v3735_v51 = vpop.f32.mrb[21].mxu1 }
0x1087   :  { %4094 = vtanh.f32 %v1549_v50  ;;  %v3424_v56 = vmul.f32 -1.442695, %v1549_v50 }
0x1089   :  { %4096 = vpow2.f32 %v3424_v56 }
0x1091   :  { %v4095_v52 = vpop.eup %4094 }
0x1092   :  { %1561 = vrot.lane.b32.xlu0 %v4095_v52, %s4267_s16 }
0x1093   :  { %v4097_v57 = vpop.eup %4096 }
0x1094   :  { %v1555_v58 = vadd.f32 1.0, %v4097_v57 }
0x1096   :  { %4098 = vrcp.f32 %v1555_v58 }
0x10a0   :  { %v4099_v59 = vpop.eup %4098 }
0x10a1   :  { %v1559_v63 = vmul.f32 %v4099_v59, %v4621_v17 }
0x10a8   :  { %v1750_v54 = vpop.permute.xlu1 %1749 }
0x10a9   :  { %v1752_v55 = vmul.f32 %v4091_v41, %v1750_v54 }
0x10ab   :  { %1754 = vrot.lane.b32.xlu1 %v1752_v55, %s4270_s28 }
0x1104   :  { %v1562_v60 = vpop.permute.xlu0 %1561 }
0x1105   :  { %v1564_v61 = vmul.f32 %v4099_v59, %v1562_v60  ;;  %v188_v60 = vadd.f32 %v4406_v13, %v4410_v16 }
0x1107   :  { %1566 = vrot.lane.b32.xlu0 %v1564_v61, %s4267_s16 }
0x111d   :  { %v1755_v62 = vpop.permute.xlu1 %1754 }
0x111e   :  { %3761 = vmatmul.mubr.msk.f32.vlgmr.msra.gmra.mrb[18].mxu0 %vm329_vm4, %v1755_v62 }
0x111f   :  { %3782 = vmatpush3.msra.mxu0 %v4365_v3  ;;  %3783 = vmatprep.mubr.msk.f32.mxu0 %vm4266_vm2, %v4265_v6 }
0x1120   :  { %3972 = vmatprep.subr.bf16.mxu0 %v4268_v36 }
0x1179   :  { %v1567_v0 = vpop.permute.xlu0 %1566 }
0x117a   :  { %v4672_v1 = vadd.f32 %v1567_v0, %v1559_v63 }
0x117c   :  { %4100 = vtanh.f32 %v4672_v1 }
0x1186   :  { %v4101_v2 = vpop.eup %4100 }
0x1187   :  { %1572 = vrot.lane.b32.xlu0 %v4101_v2, %s4267_s16 }
0x11f1   :  { %v1824_v4 = vpop.f32.mrb[18].mxu0 }
0x11f2   :  { %v3762_v5 = vpop.f32.mrb[19].mxu0  ;;  %3784 = vmatmul.mubr.msk.f32.vlgmr.msra.gmra.mrb[20].mxu0 %vm223_vm3, %v1824_v4 }
0x11f3   :  { %3974 = vmatpush3.bf16.msra.mxu0 %v4432_v37  ;;  %3794 = vmatprep.mubr.msk.f32.mxu0 %vm4266_vm2, %v4265_v6 }
0x11f4   :  { %3975 = vmatprep.subr.bf16.mxu0 %v4268_v36 }
0x11f7   :  { %3977 = vmatpush3.bf16.msra.mxu0 %v4439_v39 }
0x11f8   :  { %3815 = vmatprep.subr.mxu0 %v4265_v6 }
0x11f9   :  { %v1573_v7 = vpop.permute.xlu0 %1572 }
0x11fa   :  { %v1575_v8 = vmul.f32 %v4099_v59, %v1573_v7 }
0x11fc   :  { %1577 = vrot.lane.b32.xlu0 %v1575_v8, %s4270_s28 }
0x126e   :  { %v1578_v9 = vpop.permute.xlu0 %1577 }
0x126f   :  { %3745 = vmatmul.mubr.msk.f32.vlgmr.msra.gmra.mrb[22].mxu1 %vm329_vm4, %v1578_v9 }
0x1270   :  { %3965 = vmatpush3.bf16.msra.mxu1 %v4456_v46  ;;  %3767 = vmatprep.mubr.msk.f32.mxu1 %vm4266_vm2, %v4265_v6 }
0x1271   :  { %3966 = vmatprep.subr.bf16.mxu1 %v4268_v36 }
0x12c5   :  { %v2078_v15 = vpop.f32.mrb[20].mxu0 }
0x12c6   :  { %v2082_v17 = vadd.f32 %v2078_v15, %v183_v12  ;;  %v3785_v18 = vpop.f32.mrb[21].mxu0 }
0x12c8   :  { %4102 = vtanh.f32 %v2082_v17  ;;  %v3433_v23 = vmul.f32 -1.442695, %v2082_v17 }
0x12ca   :  { %4104 = vpow2.f32 %v3433_v23 }
0x12d2   :  { %v4103_v22 = vpop.eup %4102 }
0x12d4   :  { %v4105_v25 = vpop.eup %4104 }
0x12d5   :  { %v2086_v26 = vadd.f32 1.0, %v4105_v25 }
0x12d7   :  { %4106 = vrcp.f32 %v2086_v26 }
0x12e1   :  { %v4107_v29 = vpop.eup %4106 }
0x12e2   :  { %v2090_v31 = vmul.f32 %v4107_v29, %v4658_v48 }
0x1342   :  { %v1647_v19 = vpop.f32.mrb[22].mxu1 }
0x1343   :  { %1652 = vst.msk [vmem:[#allocation3 + $0x18] sm:$0xff] %vm223_vm3, %v1647_v19  ;;  %1829 = vrot.lane.b32.xlu0 %v1647_v19, %s4269_s6  ;;  %v3746_v20 = vpop.f32.mrb[23].mxu1 }
0x1347   :  { %2092 = vrot.lane.b32.xlu0 %v4103_v22, %s4267_s16 }
0x13b5   :  { %v1830_v27 = vpop.permute.xlu0 %1829 }
0x13b6   :  { %v1832_v10 = vsel %vm223_vm3, %v1824_v4, %v1830_v27 }
0x13b7   :  { %3768 = vmatmul.mubr.msk.f32.vlgmr.msra.gmra.mrb[24].mxu1 %vm413_vm5, %v1832_v10 }
0x13b8   :  { %3968 = vmatpush3.bf16.msra.mxu1 %v4506_v28  ;;  %3778 = vmatprep.mubr.msk.f32.mxu1 %vm4266_vm2, %v4265_v6 }
0x13b9   :  { %v2093_v24 = vpop.permute.xlu0 %2092  ;;  %3969 = vmatprep.subr.bf16.mxu1 %v4268_v36 }
0x13ba   :  { %v2095_v30 = vmul.f32 %v4107_v29, %v2093_v24 }
0x13bc   :  { %2097 = vrot.lane.b32.xlu0 %v2095_v30, %s4267_s16  ;;  %3971 = vmatpush3.bf16.msra.mxu1 %v4520_v32 }
0x13bd   :  { %3978 = vmatprep.subr.bf16.mxu1 %v4268_v36 }
0x142e   :  { %v2098_v33 = vpop.permute.xlu0 %2097 }
0x142f   :  { %v4704_v21 = vadd.f32 %v2098_v33, %v2090_v31 }
0x1431   :  { %4108 = vtanh.f32 %v4704_v21 }
0x143b   :  { %v4109_v34 = vpop.eup %4108 }
0x143c   :  { %2103 = vrot.lane.b32.xlu0 %v4109_v34, %s4267_s16 }
0x148a   :  { %v1902_v35 = vpop.f32.mrb[24].mxu1 }
0x148b   :  { %v1903_v38 = vadd.f32 %v4481_v53, %v1902_v35  ;;  %v3769_v40 = vpop.f32.mrb[25].mxu1 }
0x148d   :  { %4110 = vtanh.f32 %v1903_v38  ;;  %v3430_v44 = vmul.f32 -1.442695, %v1903_v38 }
0x148f   :  { %4112 = vpow2.f32 %v3430_v44 }
0x1497   :  { %v4111_v11 = vpop.eup %4110 }
0x1498   :  { %1915 = vrot.lane.b32.xlu1 %v4111_v11, %s4267_s16 }
0x1499   :  { %v4113_v45 = vpop.eup %4112 }
0x149a   :  { %v1909_v47 = vadd.f32 1.0, %v4113_v45 }
0x149c   :  { %4114 = vrcp.f32 %v1909_v47 }
0x14a6   :  { %v4115_v48 = vpop.eup %4114 }
0x14a7   :  { %v1913_v51 = vmul.f32 %v4115_v48, %v4672_v1 }
0x14ae   :  { %v2104_v41 = vpop.permute.xlu0 %2103 }
0x14af   :  { %v2106_v43 = vmul.f32 %v4107_v29, %v2104_v41 }
0x14b1   :  { %2108 = vrot.lane.b32.xlu0 %v2106_v43, %s4270_s28 }
0x150a   :  { %v1916_v49 = vpop.permute.xlu1 %1915 }
0x150b   :  { %v1918_v42 = vmul.f32 %v4115_v48, %v1916_v49 }
0x150d   :  { %1920 = vrot.lane.b32.xlu1 %v1918_v42, %s4267_s16 }
0x1523   :  { %v2109_v50 = vpop.permute.xlu0 %2108 }
0x1524   :  { %3795 = vmatmul.mubr.msk.f32.vlgmr.msra.gmra.mrb[22].mxu0 %vm329_vm4, %v2109_v50 }
0x1525   :  { %3816 = vmatpush3.msra.mxu0 %v4365_v3  ;;  %3817 = vmatprep.mubr.msk.f32.mxu0 %vm4266_vm2, %v4265_v6 }
0x1526   :  { %3987 = vmatprep.subr.bf16.mxu0 %v4268_v36 }
0x157f   :  { %v1921_v52 = vpop.permute.xlu1 %1920 }
0x1580   :  { %v4718_v54 = vadd.f32 %v1921_v52, %v1913_v51 }
0x1582   :  { %4116 = vtanh.f32 %v4718_v54 }
0x158c   :  { %v4117_v55 = vpop.eup %4116 }
0x158d   :  { %1926 = vrot.lane.b32.xlu1 %v4117_v55, %s4267_s16 }
0x15f7   :  { %v2178_v56 = vpop.f32.mrb[22].mxu0 }
0x15f8   :  { %v3796_v57 = vpop.f32.mrb[23].mxu0  ;;  %3818 = vmatmul.mubr.msk.f32.vlgmr.msra.gmra.mrb[24].mxu0 %vm223_vm3, %v2178_v56 }
0x15f9   :  { %3989 = vmatpush3.bf16.msra.mxu0 %v4432_v37  ;;  %3828 = vmatprep.mubr.msk.f32.mxu0 %vm4266_vm2, %v4265_v6 }
0x15fa   :  { %3990 = vmatprep.subr.bf16.mxu0 %v4268_v36 }
0x15fd   :  { %3992 = vmatpush3.bf16.msra.mxu0 %v4439_v39 }
0x15fe   :  { %3849 = vmatprep.subr.mxu0 %v4265_v6 }
0x15ff   :  { %v1927_v3 = vpop.permute.xlu1 %1926 }
0x1600   :  { %v1929_v58 = vmul.f32 %v4115_v48, %v1927_v3 }
0x1602   :  { %1931 = vrot.lane.b32.xlu1 %v1929_v58, %s4270_s28 }
0x1674   :  { %v1932_v59 = vpop.permute.xlu1 %1931 }
0x1675   :  { %3779 = vmatmul.mubr.msk.f32.vlgmr.msra.gmra.mrb[26].mxu1 %vm329_vm4, %v1932_v59 }
0x1676   :  { %3980 = vmatpush3.bf16.msra.mxu1 %v4456_v46  ;;  %3801 = vmatprep.mubr.msk.f32.mxu1 %vm4266_vm2, %v4265_v6 }
0x1677   :  { %3981 = vmatprep.subr.bf16.mxu1 %v4268_v36 }
0x16cb   :  { %v2432_v61 = vpop.f32.mrb[24].mxu0 }
0x16cc   :  { %v2436_v62 = vadd.f32 %v2432_v61, %v188_v60  ;;  %v3819_v63 = vpop.f32.mrb[25].mxu0 }
0x16ce   :  { %4118 = vtanh.f32 %v2436_v62  ;;  %v3439_v4 = vmul.f32 -1.442695, %v2436_v62 }
0x16d0   :  { %4120 = vpow2.f32 %v3439_v4 }
0x16d8   :  { %v4119_v2 = vpop.eup %4118 }
0x16da   :  { %v4121_v5 = vpop.eup %4120 }
0x16db   :  { %v2440_v7 = vadd.f32 1.0, %v4121_v5  ;;  %v3091_v5 = vld [vmem:[%s5018_s10] sm:$0xff] }
0x16dd   :  { %4122 = vrcp.f32 %v2440_v7 }
0x16e7   :  { %v4123_v16 = vpop.eup %4122 }
0x16e8   :  { %v2444_v15 = vmul.f32 %v4123_v16, %v4704_v21  ;;  %v4192_v21 = vld [vmem:[%s5012_s4] sm:$0xff] }
0x1748   :  { %v2001_v0 = vpop.f32.mrb[26].mxu1 }
0x1749   :  { %2006 = vst.msk [vmem:[#allocation3 + $0x20] sm:$0xff] %vm223_vm3, %v2001_v0  ;;  %2183 = vrot.lane.b32.xlu1 %v2001_v0, %s4269_s6  ;;  %v3780_v1 = vpop.f32.mrb[27].mxu1  ;;  %v4806_v0 = vld [vmem:[%s5016_s8] ss:$0 sm:$0xff] }
0x174d   :  { %2446 = vrot.lane.b32.xlu1 %v4119_v2, %s4267_s16 }
0x17bb   :  { %v2184_v8 = vpop.permute.xlu1 %2183 }
0x17bc   :  { %v2186_v13 = vsel %vm223_vm3, %v2178_v56, %v2184_v8 }
0x17bd   :  { %3802 = vmatmul.mubr.msk.f32.vlgmr.msra.gmra.mrb[28].mxu1 %vm413_vm5, %v2186_v13 }
0x17be   :  { %3983 = vmatpush3.bf16.msra.mxu1 %v4506_v28  ;;  %3812 = vmatprep.mubr.msk.f32.mxu1 %vm4266_vm2, %v4265_v6 }
0x17bf   :  { %v2447_v9 = vpop.permute.xlu1 %2446  ;;  %3984 = vmatprep.subr.bf16.mxu1 %v4268_v36 }
0x17c0   :  { %v2449_v12 = vmul.f32 %v4123_v16, %v2447_v9 }
0x17c2   :  { %2451 = vrot.lane.b32.xlu1 %v2449_v12, %s4267_s16  ;;  %3986 = vmatpush3.bf16.msra.mxu1 %v4520_v32 }
0x17c3   :  { %3993 = vmatprep.subr.bf16.mxu1 %v4268_v36 }
0x1834   :  { %v2452_v17 = vpop.permute.xlu1 %2451 }
0x1835   :  { %v4750_v18 = vadd.f32 %v2452_v17, %v2444_v15 }
0x1837   :  { %4124 = vtanh.f32 %v4750_v18 }
0x1841   :  { %v4125_v19 = vpop.eup %4124 }
0x1842   :  { %2457 = vrot.lane.b32.xlu1 %v4125_v19, %s4267_s16  ;;  %v3083_v19 = vld [vmem:[#allocation3] sm:$0xff] }
0x1890   :  { %v2256_v20 = vpop.f32.mrb[28].mxu1 }
0x1891   :  { %v2257_v22 = vadd.f32 %v4481_v53, %v2256_v20  ;;  %v3803_v23 = vpop.f32.mrb[29].mxu1  ;;  %v3084_v20 = vld [vmem:[#allocation3 + $0x8] sm:$0xff] }
0x1892   :  { %v3086_v23 = vld [vmem:[#allocation3 + $0x18] sm:$0xff] }
0x1893   :  { %4126 = vtanh.f32 %v2257_v22  ;;  %v3436_v10 = vmul.f32 -1.442695, %v2257_v22  ;;  %v3085_v22 = vld [vmem:[#allocation3 + $0x10] sm:$0xff] }
0x1895   :  { %4128 = vpow2.f32 %v3436_v10 }
0x189d   :  { %v4127_v25 = vpop.eup %4126 }
0x189e   :  { %2269 = vrot.lane.b32.xlu0 %v4127_v25, %s4267_s16  ;;  %v3087_v25 = vld [vmem:[#allocation3 + $0x20] sm:$0xff] }
0x189f   :  { %v4129_v29 = vpop.eup %4128 }
0x18a0   :  { %v2263_v24 = vadd.f32 1.0, %v4129_v29 }
0x18a2   :  { %4130 = vrcp.f32 %v2263_v24 }
0x18ac   :  { %v4131_v30 = vpop.eup %4130 }
0x18ad   :  { %v2267_v34 = vmul.f32 %v4131_v30, %v4718_v54 }
0x18b4   :  { %v2458_v26 = vpop.permute.xlu1 %2457 }
0x18b5   :  { %v2460_v27 = vmul.f32 %v4123_v16, %v2458_v26 }
0x18b7   :  { %2462 = vrot.lane.b32.xlu1 %v2460_v27, %s4270_s28 }
0x1910   :  { %v2270_v31 = vpop.permute.xlu0 %2269 }
0x1911   :  { %v2272_v33 = vmul.f32 %v4131_v30, %v2270_v31 }
0x1913   :  { %2274 = vrot.lane.b32.xlu0 %v2272_v33, %s4267_s16 }
0x1929   :  { %v2463_v53 = vpop.permute.xlu1 %2462 }
0x192a   :  { %3829 = vmatmul.mubr.msk.f32.vlgmr.msra.gmra.mrb[26].mxu0 %vm329_vm4, %v2463_v53 }
0x192b   :  { %3850 = vmatpush3.msra.mxu0 %v4192_v21  ;;  %3851 = vmatprep.mubr.msk.f32.mxu0 %vm4266_vm2, %v4265_v6  ;;  %v4828_v21 = vld [vmem:[%s5019_s11] ss:$0 sm:$0xff]  ;;  %s4271_s11 = smov 96  }
0x192c   :  { %4002 = vmatprep.subr.bf16.mxu0 %v4268_v36 }
0x1985   :  { %v2275_v35 = vpop.permute.xlu0 %2274 }
0x1986   :  { %v4766_v38 = vadd.f32 %v2275_v35, %v2267_v34 }
0x1988   :  { %4132 = vtanh.f32 %v4766_v38 }
0x1992   :  { %v4133_v40 = vpop.eup %4132 }
0x1993   :  { %2280 = vrot.lane.b32.xlu0 %v4133_v40, %s4267_s16 }
0x19fd   :  { %v2532_v11 = vpop.f32.mrb[26].mxu0 }
0x19fe   :  { %v3830_v41 = vpop.f32.mrb[27].mxu0  ;;  %3852 = vmatmul.mubr.msk.f32.vlgmr.msra.gmra.mrb[28].mxu0 %vm223_vm3, %v2532_v11 }
0x19ff   :  { %4004 = vmatpush3.bf16.msra.mxu0 %v4432_v37  ;;  %3862 = vmatprep.mubr.msk.f32.mxu0 %vm4266_vm2, %v4265_v6  ;;  %v4193_v37 = vld [vmem:[%s5013_s5] ss:$0 sm:$0xff] }
0x1a00   :  { %4005 = vmatprep.subr.bf16.mxu0 %v4268_v36 }
0x1a03   :  { %4007 = vmatpush3.bf16.msra.mxu0 %v4439_v39  ;;  %v193_v39 = vadd.f32 %v4193_v37, %v4408_v14 }
0x1a04   :  { %3883 = vmatprep.subr.mxu0 %v3091_v5 }
0x1a05   :  { %v2281_v43 = vpop.permute.xlu0 %2280 }
0x1a06   :  { %v2283_v44 = vmul.f32 %v4131_v30, %v2281_v43 }
0x1a08   :  { %2285 = vrot.lane.b32.xlu0 %v2283_v44, %s4270_s28 }
0x1a7a   :  { %v2286_v45 = vpop.permute.xlu0 %2285 }
0x1a7b   :  { %3813 = vmatmul.mubr.msk.f32.vlgmr.msra.gmra.mrb[30].mxu1 %vm329_vm4, %v2286_v45 }
0x1a7c   :  { %3995 = vmatpush3.bf16.msra.mxu1 %v4456_v46  ;;  %3835 = vmatprep.mubr.msk.f32.mxu1 %vm4266_vm2, %v4265_v6 }
0x1a7d   :  { %3996 = vmatprep.subr.bf16.mxu1 %v4268_v36 }
0x1ad1   :  { %v2786_v47 = vpop.f32.mrb[28].mxu0 }
0x1ad2   :  { %v2790_v48 = vadd.f32 %v2786_v47, %v193_v39  ;;  %v3853_v49 = vpop.f32.mrb[29].mxu0 }
0x1ad4   :  { %4134 = vtanh.f32 %v2790_v48  ;;  %v3445_v52 = vmul.f32 -1.442695, %v2790_v48 }
0x1ad6   :  { %4136 = vpow2.f32 %v3445_v52 }
0x1ade   :  { %v4135_v51 = vpop.eup %4134 }
0x1ae0   :  { %v4137_v54 = vpop.eup %4136 }
0x1ae1   :  { %v2794_v55 = vadd.f32 1.0, %v4137_v54 }
0x1ae3   :  { %4138 = vrcp.f32 %v2794_v55 }
0x1aed   :  { %v4139_v57 = vpop.eup %4138 }
0x1aee   :  { %v2798_v59 = vmul.f32 %v4139_v57, %v4750_v18 }
0x1b4e   :  { %v2355_v42 = vpop.f32.mrb[30].mxu1 }
0x1b4f   :  { %2360 = vst.msk [vmem:[#allocation3 + $0x28] sm:$0xff] %vm223_vm3, %v2355_v42  ;;  %2537 = vrot.lane.b32.xlu0 %v2355_v42, %s4269_s6  ;;  %v3814_v50 = vpop.f32.mrb[31].mxu1 }
0x1b53   :  { %2800 = vrot.lane.b32.xlu0 %v4135_v51, %s4267_s16 }
0x1b56   :  { %v3088_v26 = vld [vmem:[#allocation3 + $0x28] sm:$0xff] }
0x1bc1   :  { %v2538_v56 = vpop.permute.xlu0 %2537 }
0x1bc2   :  { %v2540_v14 = vsel %vm223_vm3, %v2532_v11, %v2538_v56 }
0x1bc3   :  { %3836 = vmatmul.mubr.msk.f32.vlgmr.msra.gmra.mrb[32].mxu1 %vm413_vm5, %v2540_v14 }
0x1bc4   :  { %3998 = vmatpush3.bf16.msra.mxu1 %v4506_v28  ;;  %3846 = vmatprep.mubr.msk.f32.mxu1 %vm4266_vm2, %v4265_v6 }
0x1bc5   :  { %v2801_v3 = vpop.permute.xlu0 %2800  ;;  %3999 = vmatprep.subr.bf16.mxu1 %v4268_v36 }
0x1bc6   :  { %v2803_v58 = vmul.f32 %v4139_v57, %v2801_v3 }
0x1bc8   :  { %2805 = vrot.lane.b32.xlu0 %v2803_v58, %s4267_s16  ;;  %4001 = vmatpush3.bf16.msra.mxu1 %v4520_v32 }
0x1bc9   :  { %4008 = vmatprep.subr.bf16.mxu1 %v4268_v36 }
0x1c3a   :  { %v2806_v60 = vpop.permute.xlu0 %2805 }
0x1c3b   :  { %v4799_v61 = vadd.f32 %v2806_v60, %v2798_v59 }
0x1c3d   :  { %4140 = vtanh.f32 %v4799_v61 }
0x1c47   :  { %v4141_v62 = vpop.eup %4140 }
0x1c48   :  { %2811 = vrot.lane.b32.xlu0 %v4141_v62, %s4267_s16 }
0x1c96   :  { %v2610_v63 = vpop.f32.mrb[32].mxu1 }
0x1c97   :  { %v2611_v1 = vadd.f32 %v4806_v0, %v2610_v63  ;;  %v3837_v2 = vpop.f32.mrb[33].mxu1 }
0x1c99   :  { %4142 = vtanh.f32 %v2611_v1  ;;  %v3442_v13 = vmul.f32 -1.442695, %v2611_v1 }
0x1c9b   :  { %4144 = vpow2.f32 %v3442_v13 }
0x1ca3   :  { %v4143_v4 = vpop.eup %4142 }
0x1ca4   :  { %2623 = vrot.lane.b32.xlu1 %v4143_v4, %s4267_s16 }
0x1ca5   :  { %v4145_v16 = vpop.eup %4144 }
0x1ca6   :  { %v2617_v9 = vadd.f32 1.0, %v4145_v16 }
0x1ca8   :  { %4146 = vrcp.f32 %v2617_v9 }
0x1cb2   :  { %v4147_v12 = vpop.eup %4146 }
0x1cb3   :  { %v2621_v27 = vmul.f32 %v4147_v12, %v4766_v38 }
0x1cba   :  { %v2812_v7 = vpop.permute.xlu0 %2811 }
0x1cbb   :  { %v2814_v8 = vmul.f32 %v4139_v57, %v2812_v7 }
0x1cbd   :  { %2816 = vrot.lane.b32.xlu0 %v2814_v8, %s4270_s28 }
0x1d16   :  { %v2624_v15 = vpop.permute.xlu1 %2623 }
0x1d17   :  { %v2626_v17 = vmul.f32 %v4147_v12, %v2624_v15 }
0x1d19   :  { %2628 = vrot.lane.b32.xlu1 %v2626_v17, %s4267_s16 }
0x1d2f   :  { %v2817_v18 = vpop.permute.xlu0 %2816 }
0x1d30   :  { %3863 = vmatmul.mubr.msk.f32.vlgmr.msra.gmra.mrb[30].mxu0 %vm329_vm4, %v2817_v18 }
0x1d31   :  { %3885 = vmatprep.mubr.msk.f32.mxu0 %vm223_vm3, %v3083_v19  ;;  %3884 = vmatpush3.msra.mxu0 %v3091_v5 }
0x1d34   :  { %3886 = vmatmul.mubr.msk.f32.vlgmr.msra.gmra.mrb[32].mxu0 %vm223_vm3, %v3084_v20 }
0x1d35   :  { %3888 = vmatprep.mubr.msk.f32.mxu0 %vm223_vm3, %v3085_v22 }
0x1d38   :  { %3889 = vmatmul.mubr.msk.f32.gmra.mrb[34].mxu0 %vm223_vm3, %v3086_v23 }
0x1d39   :  { %3891 = vmatprep.mubr.msk.f32.mxu0 %vm223_vm3, %v3087_v25 }
0x1d3c   :  { %3892 = vmatmul.mubr.msk.f32.gmra.mrb[36].mxu0 %vm223_vm3, %v3088_v26 }
0x1d8b   :  { %v2629_v10 = vpop.permute.xlu1 %2628 }
0x1d8c   :  { %v2631_v29 = vadd.f32 %v2629_v10, %v2621_v27 }
0x1d8e   :  { %4148 = vtanh.f32 %v2631_v29 }
0x1d98   :  { %v4149_v24 = vpop.eup %4148 }
0x1d99   :  { %2634 = vrot.lane.b32.xlu1 %v4149_v24, %s4267_s16 }
0x1e03   :  { %v2886_v30 = vpop.f32.mrb[30].mxu0 }
0x1e04   :  { %3069 = vst.msk [vmem:[#allocation6] sm:$0xff] %vm223_vm3, %v2886_v30  ;;  %v3864_v31 = vpop.f32.mrb[31].mxu0 }
0x1e07   :  { %v3887_v33 = vpop.f32.mrb[32].mxu0 }
0x1e08   :  { %v3189_v53 = vpop.f32.mrb[33].mxu0  ;;  %v4835_v11 = vadd.f32 %v3887_v33, %v4828_v21 }
0x1e09   :  { %v4839_v41 = vadd.f32 %v4828_v21, %v3189_v53 }
0x1e0a   :  { %v3246_v39 = vsel %vm3244_vm6, %v4835_v11, -inf }
0x1e0b   :  { %v2635_v34 = vpop.permute.xlu1 %2634  ;;  %v4830_v35 = vpop.f32.mrb[34].mxu0  ;;  %v3245_v48 = vsel %vm3244_vm6, %v4839_v41, -inf }
0x1e0c   :  { %v2637_v38 = vmul.f32 %v4147_v12, %v2635_v34  ;;  %v4832_v40 = vpop.f32.mrb[35].mxu0 }
0x1e0e   :  { %2639 = vrot.lane.b32.xlu1 %v2637_v38, %s4270_s28 }
0x1e0f   :  { %v3893_v43 = vpop.f32.mrb[36].mxu0 }
0x1e10   :  { %v4842_v44 = vadd.f32 %v3893_v43, %v4828_v21  ;;  %v3209_v45 = vpop.f32.mrb[37].mxu0 }
0x1e11   :  { %v4845_v37 = vadd.f32 %v4828_v21, %v3209_v45 }
0x1e12   :  { %v3251_v47 = vsel %vm3244_vm6, %v4842_v44, -inf }
0x1e13   :  { %v3252_v49 = vmax.f32 %v3246_v39, %v3251_v47  ;;  %v3249_v42 = vsel %vm3244_vm6, %v4845_v37, -inf }
0x1e14   :  { %v3250_v50 = vmax.f32 %v3245_v48, %v3249_v42 }
0x1e16   :  { %v4855_v51 = vmax.f32 %v3250_v50, %v3252_v49 }
0x1e80   :  { %v2640_v52 = vpop.permute.xlu1 %2639 }
0x1e81   :  { %3847 = vmatmul.mubr.msk.f32.vlgmr.msra.gmra.mrb[34].mxu1 %vm329_vm4, %v2640_v52 }
0x1e82   :  { %4010 = vmatpush3.bf16.msra.mxu1 %v4456_v46  ;;  %3869 = vmatprep.mubr.msk.f32.mxu1 %vm4266_vm2, %v4265_v6 }
0x1e83   :  { %4011 = vmatprep.subr.bf16.mxu1 %v4268_v36 }
0x1f54   :  { %v2709_v54 = vpop.f32.mrb[34].mxu1 }
0x1f55   :  { %2714 = vst.msk [vmem:[#allocation3 + $0x30] sm:$0xff] %vm223_vm3, %v2709_v54  ;;  %2891 = vrot.lane.b32.xlu1 %v2709_v54, %s4269_s6  ;;  %v3848_v55 = vpop.f32.mrb[35].mxu1 }
0x1f5c   :  { %v3089_v56 = vld [vmem:[#allocation3 + $0x30] sm:$0xff] }
0x1f5d   :  { %3894 = vmatprep.mubr.msk.f32.mxu0 %vm223_vm3, %v3089_v56 }
0x1fc7   :  { %v2892_v14 = vpop.permute.xlu1 %2891 }
0x1fc8   :  { %v2894_v57 = vsel %vm223_vm3, %v2886_v30, %v2892_v14 }
0x1fc9   :  { %3870 = vmatmul.mubr.msk.f32.vlgmr.msra.gmra.mrb[36].mxu1 %vm413_vm5, %v2894_v57 }
0x1fca   :  { %4013 = vmatpush3.bf16.msra.mxu1 %v4506_v28  ;;  %3880 = vmatprep.mubr.msk.f32.mxu1 %vm4266_vm2, %v4265_v6 }
0x1fcb   :  { %4014 = vmatprep.subr.bf16.mxu1 %v4268_v36 }
0x1fce   :  { %4016 = vmatpush3.bf16.msra.mxu1 %v4520_v32 }
0x209c   :  { %v2964_v46 = vpop.f32.mrb[36].mxu1 }
0x209d   :  { %v2965_v3 = vadd.f32 %v4806_v0, %v2964_v46  ;;  %v3871_v58 = vpop.f32.mrb[37].mxu1 }
0x209f   :  { %4150 = vtanh.f32 %v2965_v3  ;;  %v3448_v60 = vmul.f32 -1.442695, %v2965_v3 }
0x20a1   :  { %4152 = vpow2.f32 %v3448_v60 }
0x20a9   :  { %v4151_v59 = vpop.eup %4150 }
0x20aa   :  { %2977 = vrot.lane.b32.xlu0 %v4151_v59, %s4267_s16 }
0x20ab   :  { %v4153_v62 = vpop.eup %4152 }
0x20ac   :  { %v2971_v63 = vadd.f32 1.0, %v4153_v62 }
0x20ae   :  { %4154 = vrcp.f32 %v2971_v63 }
0x20b8   :  { %v4155_v28 = vpop.eup %4154 }
0x20b9   :  { %v2975_v36 = vmul.f32 %v4155_v28, %v2631_v29 }
0x211c   :  { %v2978_v1 = vpop.permute.xlu0 %2977 }
0x211d   :  { %v2980_v6 = vmul.f32 %v4155_v28, %v2978_v1 }
0x211f   :  { %2982 = vrot.lane.b32.xlu1 %v2980_v6, %s4267_s16 }
0x2191   :  { %v2983_v32 = vpop.permute.xlu1 %2982 }
0x2192   :  { %v2985_v2 = vadd.f32 %v2983_v32, %v2975_v36 }
0x2194   :  { %4156 = vtanh.f32 %v2985_v2 }
0x219e   :  { %v4157_v0 = vpop.eup %4156 }
0x219f   :  { %2988 = vrot.lane.b32.xlu0 %v4157_v0, %s4267_s16  ;;  %s4272_s16 = smov [#allocation6]  }
0x21a3   :  { %3071 = vrot.lane.b32.xlu0 %v4799_v61, %s4271_s11 }
0x2211   :  { %v2989_v4 = vpop.permute.xlu0 %2988 }
0x2212   :  { %v2991_v5 = vmul.f32 %v4155_v28, %v2989_v4 }
0x2214   :  { %2993 = vrot.lane.b32.xlu1 %v2991_v5, %s4270_s28  ;;  %s3359_s28 = sshll.u32 %s4272_s16, 4  ;;  %s3360_s28 = int_to_ptr.vmem [resolvable:$true] %s3359_s28 }
0x2215   :  { %v3072_v7 = vpop.permute.xlu0 %3071  ;;  %s4195_s2 = scalar_lea.vmem %s3360_s28, 256  ;;  %p4200_p1 = scmp.lt.s32.totalorder %s3360_s28, %s3360_s28 }
0x2216   :  { %3074 = vst.msk [vmem:[#allocation8] sm:$0xff] %vm329_vm4, %v3072_v7  ;;  %p4196_p0 = scmp.ne.s32.totalorder %s3360_s28, %s4195_s2  ;;  %p4201_p2 = scmp.lt.s32.totalorder %s4195_s2, %s4195_s2 }
0x2218   :  { %3078 = vrot.lane.b32.xlu1 %v2985_v2, %s4271_s11  ;;  %p4202_p3 = por %p4201_p2, %p4200_p1 }
0x221a   :  { %p4203_p4 = pnand %p4202_p3, %p4196_p0 }
0x2286   :  { %v2994_v8 = vpop.permute.xlu1 %2993 }
0x2287   :  { %3881 = vmatmul.mubr.msk.f32.vlgmr.msra.gmra.mrb[38].mxu1 %vm329_vm4, %v2994_v8 }
0x228a   :  { %v3079_v13 = vpop.permute.xlu1 %3078 }
0x228b   :  { %3082 = vst.msk [vmem:[#allocation8 + $0x8] sm:$0xff] %vm329_vm4, %v3079_v13 }
0x235a   :  { %v3063_v16 = vpop.f32.mrb[38].mxu1 }
0x235b   :  { %3068 = vst.msk [vmem:[#allocation3 + $0x38] sm:$0xff] %vm223_vm3, %v3063_v16  ;;  %3076 = vst.msk [vmem:[#allocation6 + $0x8] sm:$0xff] %vm223_vm3, %v3063_v16  ;;  %v3882_v61 = vpop.f32.mrb[39].mxu1 }
0x2362   :  { %v3090_v9 = vld [vmem:[#allocation3 + $0x38] sm:$0xff] }
0x2363   :  { %3895 = vmatmul.mubr.msk.f32.gmra.mrb[38].mxu0 %vm223_vm3, %v3090_v9 }
0x2364   :  { %4206 = shalt.err (!%p4203_p4)
}
0x2365   :  { %s4207_s20 = scalar_lea.hbm %s5021_s13, 256 }
0x2366   :  { %p4208_p5 = scmp.ne.s32.totalorder %s5021_s13, %s4207_s20  ;;  %p4211_p6 = scmp.lt.u32.totalorder %s4207_s20, %s5021_s13 }
0x2368   :  { %p4213_p7 = pnand %p4211_p6, %p4208_p5 }
0x236a   :  { %4216 = shalt.err (!%p4213_p7)
}
0x236b   :  { %s4273_s24 = smov 128   ;;  %s4274_s27 = smov [#allocation8]  }
0x236c   :  { %3365 = dma.vmem_to_hbm [thread:$0]  %s3360_s28, 256, %s5021_s13, [#allocation7], %s4273_s24, %s4273_s24, %s4269_s6  }
0x236d   :  { %s3371_s29 = sshll.u32 %s4274_s27, 4  ;;  %s3372_s29 = int_to_ptr.vmem [resolvable:$true] %s3371_s29 }
0x236e   :  { %s4217_s30 = scalar_lea.vmem %s3372_s29, 256  ;;  %p4222_p9 = scmp.lt.s32.totalorder %s3372_s29, %s3372_s29 }
0x236f   :  { %p4218_p8 = scmp.ne.s32.totalorder %s3372_s29, %s4217_s30  ;;  %p4223_p10 = scmp.lt.s32.totalorder %s4217_s30, %s4217_s30 }
0x2371   :  { %p4224_p11 = por %p4223_p10, %p4222_p9 }
0x2373   :  { %p4225_p12 = pnand %p4224_p11, %p4218_p8 }
0x2375   :  { %4228 = shalt.err (!%p4225_p12)
}
0x2376   :  { %s4229_s4 = scalar_lea.hbm %s5022_s14, 256 }
0x2377   :  { %p4230_p13 = scmp.ne.s32.totalorder %s5022_s14, %s4229_s4  ;;  %p4233_p0 = scmp.lt.u32.totalorder %s4229_s4, %s5022_s14 }
0x2379   :  { %p4235_p1 = pnand %p4233_p0, %p4230_p13 }
0x237b   :  { %4238 = shalt.err (!%p4235_p1)
}
0x237c   :  { %3377 = dma.vmem_to_hbm [thread:$0]  %s3372_s29, 256, %s5022_s14, [#allocation7], %s4273_s24, %s4273_s24, %s4269_s6   ;;  %v4916_v12 = vadd.f32 %v4830_v35, %v4828_v21  ;;  %v4920_v15 = vadd.f32 %v4828_v21, %v4832_v40  ;;  %v3230_v36 = vmul.f32 1.442695, %v4835_v11  ;;  %v3228_v2 = vmul.f32 1.442695, %v4839_v41 }
0x237d   :  { %v3238_v61 = vmul.f32 1.442695, %v4842_v44  ;;  %v3236_v9 = vmul.f32 1.442695, %v4845_v37  ;;  %vm3316_vm7 = vcmask 367616   ;;  %vm3325_vm8 = vcmask 695296  }
0x237e   :  { %v3248_v22 = vsel %vm3244_vm6, %v4916_v12, -inf  ;;  %v3247_v25 = vsel %vm3244_vm6, %v4920_v15, -inf  ;;  %v3234_v5 = vmul.f32 1.442695, %v4916_v12  ;;  %v3232_v8 = vmul.f32 1.442695, %v4920_v15 }
0x237f   :  { %s4275_s14 = smov [#allocation4]  }
0x2380   :  { %s3347_s8 = sshll.u32 %s4275_s14, 4  ;;  %s3348_s8 = int_to_ptr.vmem [resolvable:$true] %s3347_s8 }
0x2381   :  { %s4239_s10 = scalar_lea.vmem %s3348_s8, 1024  ;;  %p4244_p3 = scmp.lt.s32.totalorder %s3348_s8, %s3348_s8 }
0x2382   :  { %p4240_p2 = scmp.ne.s32.totalorder %s3348_s8, %s4239_s10  ;;  %p4245_p4 = scmp.lt.s32.totalorder %s4239_s10, %s4239_s10 }
0x2384   :  { %p4246_p5 = por %p4245_p4, %p4244_p3 }
0x2386   :  { %p4247_p6 = pnand %p4246_p5, %p4240_p2 }
0x2436   :  { %v3896_v17 = vpop.f32.mrb[38].mxu0 }
0x2437   :  { %v4923_v18 = vadd.f32 %v3896_v17, %v4828_v21  ;;  %v3219_v19 = vpop.f32.mrb[39].mxu0 }
0x2438   :  { %v4926_v20 = vadd.f32 %v4828_v21, %v3219_v19 }
0x2439   :  { %v3255_v23 = vsel %vm3244_vm6, %v4923_v18, -inf  ;;  %v3242_v17 = vmul.f32 1.442695, %v4923_v18 }
0x243a   :  { %v3256_v26 = vmax.f32 %v3248_v22, %v3255_v23  ;;  %v3253_v27 = vsel %vm3244_vm6, %v4926_v20, -inf  ;;  %v3240_v16 = vmul.f32 1.442695, %v4926_v20 }
0x243b   :  { %v3254_v10 = vmax.f32 %v3247_v25, %v3253_v27 }
0x243d   :  { %v3258_v29 = vmax.f32 %v3254_v10, %v3256_v26 }
0x243f   :  { %v3259_v24 = vmax.f32 %v4855_v51, %v3258_v29 }
0x2441   :  { %v3260_v30 = vsub.f32 %v4839_v41, %v3259_v24  ;;  %v3261_v31 = vsub.f32 %v4835_v11, %v3259_v24  ;;  %v3262_v33 = vsub.f32 %v4920_v15, %v3259_v24  ;;  %v3263_v53 = vsub.f32 %v4916_v12, %v3259_v24 }
0x2442   :  { %v3264_v21 = vsub.f32 %v4845_v37, %v3259_v24  ;;  %v3265_v34 = vsub.f32 %v4842_v44, %v3259_v24  ;;  %v3266_v35 = vsub.f32 %v4926_v20, %v3259_v24  ;;  %v3267_v38 = vsub.f32 %v4923_v18, %v3259_v24 }
0x2443   :  { %v3268_v40 = vmul.f32 1.442695, %v3260_v30  ;;  %v3270_v43 = vmul.f32 1.442695, %v3261_v31  ;;  %v3272_v45 = vmul.f32 1.442695, %v3262_v33 }
0x2444   :  { %v3274_v39 = vmul.f32 1.442695, %v3263_v53  ;;  %v3276_v47 = vmul.f32 1.442695, %v3264_v21  ;;  %v3278_v48 = vmul.f32 1.442695, %v3265_v34 }
0x2445   :  { %4158 = vpow2.f32 %v3268_v40  ;;  %v3280_v49 = vmul.f32 1.442695, %v3266_v35  ;;  %v3282_v42 = vmul.f32 1.442695, %v3267_v38 }
0x2446   :  { %4160 = vpow2.f32 %v3270_v43 }
0x2447   :  { %4162 = vpow2.f32 %v3272_v45 }
0x2448   :  { %4164 = vpow2.f32 %v3274_v39 }
0x2449   :  { %4166 = vpow2.f32 %v3276_v47 }
0x244a   :  { %4168 = vpow2.f32 %v3278_v48 }
0x244b   :  { %4170 = vpow2.f32 %v3280_v49 }
0x244c   :  { %4172 = vpow2.f32 %v3282_v42 }
0x244d   :  { %4174 = vpow2.f32 %v3230_v36 }
0x244e   :  { %4176 = vpow2.f32 %v3228_v2 }
0x244f   :  { %v4159_v50 = vpop.eup %4158 }
0x2450   :  { %v4161_v51 = vpop.eup %4160  ;;  %v3284_v52 = vsel %vm3244_vm6, %v4159_v50, 0.0 }
0x2451   :  { %v4163_v54 = vpop.eup %4162  ;;  %v3285_v55 = vsel %vm3244_vm6, %v4161_v51, 0.0 }
0x2452   :  { %v4165_v56 = vpop.eup %4164  ;;  %v3286_v14 = vadd.f32 %v3285_v55, %v3284_v52  ;;  %v3287_v57 = vsel %vm3244_vm6, %v4163_v54, 0.0 }
0x2453   :  { %v4167_v46 = vpop.eup %4166  ;;  %v3289_v58 = vsel %vm3244_vm6, %v4165_v56, 0.0 }
0x2454   :  { %v3288_v3 = vadd.f32 %v3287_v57, %v3286_v14  ;;  %v4169_v59 = vpop.eup %4168  ;;  %v3291_v62 = vsel %vm3244_vm6, %v4167_v46, 0.0 }
0x2455   :  { %v4171_v63 = vpop.eup %4170  ;;  %v3293_v1 = vsel %vm3244_vm6, %v4169_v59, 0.0 }
0x2456   :  { %v3290_v60 = vadd.f32 %v3289_v58, %v3288_v3  ;;  %v4173_v6 = vpop.eup %4172  ;;  %v3295_v0 = vsel %vm3244_vm6, %v4171_v63, 0.0 }
0x2457   :  { %v3297_v7 = vsel %vm3244_vm6, %v4173_v6, 0.0  ;;  %v4175_v19 = vpop.eup %4174 }
0x2458   :  { %v3292_v28 = vadd.f32 %v3291_v62, %v3290_v60  ;;  %v4177_v22 = vpop.eup %4176 }
0x245a   :  { %v3294_v32 = vadd.f32 %v3293_v1, %v3292_v28 }
0x245c   :  { %v3296_v4 = vadd.f32 %v3295_v0, %v3294_v32 }
0x245e   :  { %v3298_v13 = vadd.f32 %v3297_v7, %v3296_v4 }
0x2460   :  { %4178 = vrcp.f32 %v3298_v13 }
0x2461   :  { %4180 = vpow2.f32 %v3234_v5 }
0x2462   :  { %4182 = vpow2.f32 %v3232_v8 }
0x2463   :  { %4184 = vpow2.f32 %v3240_v16 }
0x2464   :  { %4186 = vpow2.f32 %v3238_v61 }
0x2465   :  { %4188 = vpow2.f32 %v3236_v9 }
0x2466   :  { %4190 = vpow2.f32 %v3242_v17 }
0x246a   :  { %v4179_v23 = vpop.eup %4178 }
0x246b   :  { %v4181_v25 = vpop.eup %4180  ;;  %v3306_v26 = vmul.f32 %v4179_v23, %v4171_v63  ;;  %v3300_v27 = vmul.f32 %v4179_v23, %v4159_v50  ;;  %v3301_v10 = vmul.f32 %v4179_v23, %v4161_v51  ;;  %v3302_v29 = vmul.f32 %v4179_v23, %v4163_v54 }
0x246c   :  { %v4183_v24 = vpop.eup %4182  ;;  %v3303_v30 = vmul.f32 %v4179_v23, %v4165_v56  ;;  %v3304_v31 = vmul.f32 %v4179_v23, %v4167_v46  ;;  %v3305_v33 = vmul.f32 %v4179_v23, %v4169_v59  ;;  %v3307_v53 = vmul.f32 %v4179_v23, %v4173_v6 }
0x246d   :  { %v4185_v21 = vpop.eup %4184  ;;  %v3314_v34 = vsel %vm3244_vm6, %v3306_v26, %v4926_v20  ;;  %v3308_v35 = vsel %vm3244_vm6, %v3300_v27, %v4839_v41  ;;  %v3309_v38 = vsel %vm3244_vm6, %v3301_v10, %v4835_v11  ;;  %v3310_v40 = vsel %vm3244_vm6, %v3302_v29, %v4920_v15 }
0x246e   :  { %v4187_v43 = vpop.eup %4186  ;;  %v3323_v45 = vsel %vm3316_vm7, %v3314_v34, %v4185_v21  ;;  %v3311_v39 = vsel %vm3244_vm6, %v3303_v30, %v4916_v12  ;;  %v3312_v47 = vsel %vm3244_vm6, %v3304_v31, %v4845_v37  ;;  %v3313_v20 = vsel %vm3244_vm6, %v3305_v33, %v4842_v44 }
0x246f   :  { %v4189_v41 = vpop.eup %4188  ;;  %v3332_v11 = vsel %vm3325_vm8, %v3323_v45, 0.0  ;;  %v3315_v15 = vsel %vm3244_vm6, %v3307_v53, %v4923_v18  ;;  %v3317_v48 = vsel %vm3316_vm7, %v3308_v35, %v4177_v22  ;;  %v3318_v49 = vsel %vm3316_vm7, %v3309_v38, %v4175_v19 }
0x2470   :  { %v4191_v42 = vpop.eup %4190  ;;  %3340 = vst [vmem:[#allocation4 + $0x30] sm:$0xff] %v3332_v11  ;;  %v3319_v12 = vsel %vm3316_vm7, %v3310_v40, %v4183_v24  ;;  %v3320_v37 = vsel %vm3316_vm7, %v3311_v39, %v4181_v25  ;;  %v3321_v44 = vsel %vm3316_vm7, %v3312_v47, %v4189_v41  ;;  %v3322_v50 = vsel %vm3316_vm7, %v3313_v20, %v4187_v43 }
0x2471   :  { %v3324_v51 = vsel %vm3316_vm7, %v3315_v15, %v4191_v42  ;;  %v3326_v52 = vsel %vm3325_vm8, %v3317_v48, 0.0  ;;  %v3327_v18 = vsel %vm3325_vm8, %v3318_v49, 0.0  ;;  %v3328_v54 = vsel %vm3325_vm8, %v3319_v12, 0.0 }
0x2472   :  { %v3329_v55 = vsel %vm3325_vm8, %v3320_v37, 0.0  ;;  %v3330_v56 = vsel %vm3325_vm8, %v3321_v44, 0.0  ;;  %v3331_v14 = vsel %vm3325_vm8, %v3322_v50, 0.0  ;;  %v3333_v57 = vsel %vm3325_vm8, %v3324_v51, 0.0  ;;  %3334 = vst [vmem:[#allocation4] sm:$0xff] %v3326_v52  ;;  %3335 = vst [vmem:[#allocation4 + $0x8] sm:$0xff] %v3327_v18 }
0x2473   :  { %3336 = vst [vmem:[#allocation4 + $0x10] sm:$0xff] %v3328_v54  ;;  %3337 = vst [vmem:[#allocation4 + $0x18] sm:$0xff] %v3329_v55 }
0x2474   :  { %3338 = vst [vmem:[#allocation4 + $0x20] sm:$0xff] %v3330_v56  ;;  %3339 = vst [vmem:[#allocation4 + $0x28] sm:$0xff] %v3331_v14 }
0x2475   :  { %3341 = vst [vmem:[#allocation4 + $0x38] sm:$0xff] %v3333_v57 }
0x2476   :  { %4250 = shalt.err (!%p4247_p6)
}
0x2477   :  { %s4251_s28 = scalar_lea.hbm %s5020_s12, 1024 }
0x2478   :  { %p4252_p7 = scmp.ne.s32.totalorder %s5020_s12, %s4251_s28  ;;  %p4255_p8 = scmp.lt.u32.totalorder %s4251_s28, %s5020_s12 }
0x247a   :  { %p4257_p9 = pnand %p4255_p8, %p4252_p7 }
0x247c   :  { %4260 = shalt.err (!%p4257_p9)
}
0x247d   :  { %3353 = dma.vmem_to_hbm [thread:$0]  %s3348_s8, 1024, %s5020_s12, [#allocation5], %s4273_s24, %s4273_s24, %s4269_s6  }
0x247e   :  { %4261 = dma.done.wait [#allocation5], 1024  }
0x247f   :  { %4262 = vsyncadd [#allocation5], 4294966272 }
0x2480   :  { %4263 = dma.done.wait [#allocation7], 512  }
0x2481   :  { %4264 = vsyncadd [#allocation7], 4294966784 }
0x2482   :  { %3387 = vsyncpa [#allocation5], 1 }
0x2483   :  { %3388 = vsyncpa [#allocation7], 1 }

</bundles_post_ra>
